<compile_context>
chip_gen: v7x
topology: tpu7x:2x2x1
jax: 0.10.0
libtpu: 0.0.40
codegen_flags: <defaults>
</compile_context>

<pallas_src>
import functools

import jax
import jax.numpy as jnp
from jax.experimental import pallas as pl
from jax.experimental.pallas import tpu as pltpu


def _round_up(x, m):
    return ((x + m - 1) // m) * m


def _vmem_capacity_bytes():
    try:
        return int(pltpu.get_tpu_info().vmem_capacity_bytes)
    except Exception:
        return 64 << 20  # conservative (v7x per-TC VMEM)


def _gabor_kernel(x_ref, w_ref, b_ref, o_ref, *, of_pad, operand_dtype):
    # One MXU matmul for both linears (scales pre-folded into W/b); epilogue is
    # exactly one cos + one exp per element (EUP) and one VPU multiply.
    x = x_ref[...]
    if x.dtype != operand_dtype:
        x = x.astype(operand_dtype)          # in-register cast; no extra HBM pass
    y = jnp.dot(x, w_ref[...], preferred_element_type=jnp.float32) + b_ref[...]
    omega = y[:, :of_pad]                    # lane-aligned slice (freqs half)
    s = y[:, of_pad:]                        # scale half
    o_ref[...] = (jnp.cos(omega) * jnp.exp(-(s * s))).astype(o_ref.dtype)


def real_gabor_layer(x, w_freqs, b_freqs, w_scale, b_scale, *,
                     omega_0=10.0, scale_0=10.0, tm=1024,
                     operand_dtype=jnp.float32, out_dtype=jnp.float32,
                     return_padded=False):
    """WIRE RealGaborLayer forward.

    x   : (N, in_features)                        activations (any float dtype)
    w_* : (in_features, out_features)             pre-transposed weights
    b_* : (out_features,) or (1, out_features)    biases
    operand_dtype: jnp.float32 (exact, default) or jnp.bfloat16 (native MXU
                   rate; x is cast in-kernel, weights in the tiny wrapper fuse).
    out_dtype    : jnp.float32 (default, exact) or jnp.bfloat16 (halves the
                   dominant output writeback for stacked layers).
    return_padded: keep the lane-padded (N, round_up(out_f,128)) layout (pad
                   lanes are 1.0) to avoid a per-layer strided column slice.
    """
    n, in_f = x.shape
    out_f = w_freqs.shape[1]
    assert w_scale.shape == (in_f, out_f)
    op_dt = jnp.dtype(operand_dtype)
    out_dt = jnp.dtype(out_dtype)

    # ---- Fuse + lane-pad weights, folding omega_0 / scale_0 in (one-time) ---
    of_pad = _round_up(out_f, 128)            # lane-dense output / MXU N dim
    w = jnp.zeros((in_f, 2 * of_pad), op_dt)
    w = w.at[:, :out_f].set((omega_0 * w_freqs).astype(op_dt))
    w = w.at[:, of_pad:of_pad + out_f].set((scale_0 * w_scale).astype(op_dt))
    b = jnp.zeros((1, 2 * of_pad), jnp.float32)
    b = b.at[:, :out_f].set(omega_0 * jnp.ravel(b_freqs).astype(jnp.float32))
    b = b.at[:, of_pad:of_pad + out_f].set(
        scale_0 * jnp.ravel(b_scale).astype(jnp.float32))

    # ---- Row tile: clamp to batch, to a VMEM budget, prefer an even grid ----
    x_bytes = jnp.dtype(x.dtype).itemsize
    w_bytes = in_f * 2 * of_pad * op_dt.itemsize + 2 * of_pad * 4

    def vmem_need(t):                          # conservative: double-buffer all
        return 2 * (t * in_f * x_bytes + t * of_pad * out_dt.itemsize) + 2 * w_bytes

    cap = _vmem_capacity_bytes()
    tm = max(8, min(tm, _round_up(n, 8)))
    while tm > 128 and vmem_need(tm) > int(0.55 * cap):
        tm = max(128, _round_up(tm // 2, 8))   # re-derived for v7x's 64 MiB
    steps = pl.cdiv(n, tm)
    if steps > 1 and steps % 2 == 1:           # even step count -> both v7x TCs busy
        tm = max(8, _round_up(pl.cdiv(n, steps + 1), 8))
        steps = pl.cdiv(n, tm)

    vmem_limit = int(min(vmem_need(tm) + (4 << 20), int(0.8 * cap)))
    vmem_limit = max(vmem_limit, 24 << 20)

    kernel = functools.partial(_gabor_kernel, of_pad=of_pad, operand_dtype=op_dt)

    cost = pl.CostEstimate(
        flops=2 * n * in_f * (2 * of_pad),
        transcendentals=2 * n * of_pad,
        bytes_accessed=(n * in_f * x_bytes + w_bytes + n * of_pad * out_dt.itemsize),
    )

    def _run(const_mode):
        wb_kwargs = {} if const_mode is None else {"pipeline_mode": const_mode}
        return pl.pallas_call(
            kernel,
            out_shape=jax.ShapeDtypeStruct((n, of_pad), out_dt),
            grid_spec=pltpu.PrefetchScalarGridSpec(
                num_scalar_prefetch=0,
                grid=(steps,),
                in_specs=[
                    pl.BlockSpec((tm, in_f), lambda i: (i, 0)),               # x rows
                    pl.BlockSpec((in_f, 2 * of_pad), lambda i: (0, 0), **wb_kwargs),
                    pl.BlockSpec((1, 2 * of_pad), lambda i: (0, 0), **wb_kwargs),
                ],
                out_specs=pl.BlockSpec((tm, of_pad), lambda i: (i, 0)),       # lane-dense
            ),
            compiler_params=pltpu.CompilerParams(
                dimension_semantics=("parallel",),
                vmem_limit_bytes=vmem_limit),
            cost_estimate=cost,
        )(x, w, b)

    try:
        # Constant-index weight/bias blocks are fetched once: single buffer.
        out = _run(pl.Buffered(1))
    except Exception:
        # Fallback for jax versions that reject buffer_count=1 / pipeline_mode.
        out = _run(None)

    if return_padded:
        return out                             # (n, of_pad); pad lanes hold 1.0
    return out if out_f == of_pad else out[:, :out_f]


def _init_linear_params(key, in_features, out_features):
    # Deterministic stand-in for nn.Linear default init: U(-1/sqrt(in), 1/sqrt(in)).
    kw, kb = jax.random.split(key)
    bound = 1.0 / jnp.sqrt(jnp.float32(in_features))
    w = jax.random.uniform(kw, (in_features, out_features), jnp.float32, -bound, bound)
    b = jax.random.uniform(kb, (out_features,), jnp.float32, -bound, bound)
    return w, b


if __name__ == "__main__":
    key = jax.random.PRNGKey(0)
    k_x, k_f, k_s = jax.random.split(key, 3)

    batch, in_features, out_features = 64, 16, 32
    omega_0, scale_0 = 10.0, 10.0

    x = jax.random.normal(k_x, (batch, in_features), jnp.float32)
    w_freqs, b_freqs = _init_linear_params(k_f, in_features, out_features)
    w_scale, b_scale = _init_linear_params(k_s, in_features, out_features)

    def reference(xv):
        omega = omega_0 * (xv @ w_freqs + b_freqs[None, :])
        s = (xv @ w_scale + b_scale[None, :]) * scale_0
        return jnp.cos(omega) * jnp.exp(-s ** 2)

    # ---- Exact f32 path (default): matches PyTorch forward semantics --------
    out = jax.block_until_ready(real_gabor_layer(
        x, w_freqs, b_freqs, w_scale, b_scale, omega_0=omega_0, scale_0=scale_0))
    assert out.shape == (batch, out_features)
    assert jnp.allclose(out, reference(x), atol=1e-4, rtol=1e-4), "f32 mismatch"

    # ---- Ragged batch: n % tm != 0 handled by the cdiv grid (no wrapper pad) -
    x_ragged = x[:53]
    out_r = jax.block_until_ready(real_gabor_layer(
        x_ragged, w_freqs, b_freqs, w_scale, b_scale,
        omega_0=omega_0, scale_0=scale_0, tm=32))
    assert out_r.shape == (53, out_features)
    assert jnp.allclose(out_r, reference(x_ragged), atol=1e-4, rtol=1e-4), \
        "ragged-batch mismatch"

    # ---- bf16-output path (halves writeback bytes for stacked WIRE layers) --
    out_bf = jax.block_until_ready(real_gabor_layer(
        x, w_freqs, b_freqs, w_scale, b_scale, omega_0=omega_0, scale_0=scale_0,
        out_dtype=jnp.bfloat16))
    assert out_bf.dtype == jnp.bfloat16
    assert jnp.allclose(out_bf.astype(jnp.float32), reference(x),
                        atol=2e-2, rtol=2e-2), "bf16-output mismatch"

    print("KERNEL_OK")
</pallas_src>

<mosaic_0001>
module attributes {stable_mosaic.version = 11 : i64} {
  func.func @_gabor_kernel(%arg0: i32, %arg1: memref<64x16xf32, #tpu.memory_space<vmem>>, %arg2: memref<16x256xf32, #tpu.memory_space<vmem>>, %arg3: memref<1x256xf32, #tpu.memory_space<vmem>>, %arg4: memref<64x128xf32, #tpu.memory_space<vmem>>) attributes {dimension_semantics = [#tpu.dimension_semantics<parallel>], iteration_bounds = array<i64: 1>, scalar_prefetch = 0 : i64, scratch_operands = 0 : i64, tpu.core_type = #tpu.core_type<tc>, window_params = [{transform_indices = @transform_0, window_bounds = array<i64: 64, 16>}, {pipeline_mode = #tpu.pipeline_mode<synchronous>, transform_indices = @transform_1, window_bounds = array<i64: 16, 256>}, {pipeline_mode = #tpu.pipeline_mode<synchronous>, transform_indices = @transform_2, window_bounds = array<i64: 1, 256>}, {transform_indices = @transform_3, window_bounds = array<i64: 64, 128>}]} {
    %c0 = arith.constant 0 : index
    %c0_0 = arith.constant 0 : index
    %0 = vector.load %arg1[%c0, %c0_0] : memref<64x16xf32, #tpu.memory_space<vmem>>, vector<64x16xf32>
    %c0_1 = arith.constant 0 : index
    %c0_2 = arith.constant 0 : index
    %1 = vector.load %arg2[%c0_1, %c0_2] : memref<16x256xf32, #tpu.memory_space<vmem>>, vector<16x256xf32>
    %cst = arith.constant dense<0.000000e+00> : vector<64x256xf32>
    %2 = tpu.matmul %0, %1, %cst {dimension_numbers = #tpu.dot_dimension_numbers<[1], [0], [0], [1], [0, 0, 1, 1], [], []>} : vector<64x16xf32>, vector<16x256xf32>, vector<64x256xf32> -> vector<64x256xf32>
    %c0_3 = arith.constant 0 : index
    %c0_4 = arith.constant 0 : index
    %3 = vector.load %arg3[%c0_3, %c0_4] : memref<1x256xf32, #tpu.memory_space<vmem>>, vector<1x256xf32>
    %4 = vector.broadcast %3 : vector<1x256xf32> to vector<64x256xf32>
    %5 = arith.addf %2, %4 : vector<64x256xf32>
    %6 = vector.extract_strided_slice %5 {offsets = [0, 0], sizes = [64, 128], strides = [1, 1]} : vector<64x256xf32> to vector<64x128xf32>
    %7 = vector.extract_strided_slice %5 {offsets = [0, 128], sizes = [64, 128], strides = [1, 1]} : vector<64x256xf32> to vector<64x128xf32>
    %8 = math.cos %6 : vector<64x128xf32>
    %9 = arith.mulf %7, %7 : vector<64x128xf32>
    %cst_5 = arith.constant 0.000000e+00 : f32
    %10 = vector.broadcast %cst_5 : f32 to vector<64x128xf32>
    %11 = arith.subf %10, %9 : vector<64x128xf32>
    %12 = math.exp %11 : vector<64x128xf32>
    %13 = arith.mulf %8, %12 : vector<64x128xf32>
    %c0_6 = arith.constant 0 : index
    %c0_7 = arith.constant 0 : index
    %14 = vector.load %arg4[%c0_6, %c0_7] : memref<64x128xf32, #tpu.memory_space<vmem>>, vector<64x128xf32>
    tpu.vector_store %arg4[%c0_6, %c0_7], %13 {strides = array<i32>} : memref<64x128xf32, #tpu.memory_space<vmem>>, vector<64x128xf32>,
    return
  }
  func.func @transform_0(%arg0: i32) -> (i32, i32) {
    %c0_i32 = arith.constant 0 : i32
    %c0_i32_0 = arith.constant 0 : i32
    return %arg0, %c0_i32 : i32, i32
  }
  func.func @transform_1(%arg0: i32) -> (i32, i32) {
    %c0_i32 = arith.constant 0 : i32
    %c0_i32_0 = arith.constant 0 : i32
    %c0_i32_1 = arith.constant 0 : i32
    return %c0_i32, %c0_i32_0 : i32, i32
  }
  func.func @transform_2(%arg0: i32) -> (i32, i32) {
    %c0_i32 = arith.constant 0 : i32
    %c0_i32_0 = arith.constant 0 : i32
    %c0_i32_1 = arith.constant 0 : i32
    return %c0_i32, %c0_i32_0 : i32, i32
  }
  func.func @transform_3(%arg0: i32) -> (i32, i32) {
    %c0_i32 = arith.constant 0 : i32
    %c0_i32_0 = arith.constant 0 : i32
    return %arg0, %c0_i32 : i32, i32
  }
}

module attributes {stable_mosaic.version = 11 : i64} {
  func.func @_gabor_kernel(%arg0: i32, %arg1: memref<64x16xf32, #tpu.memory_space<vmem>>, %arg2: memref<16x256xf32, #tpu.memory_space<vmem>>, %arg3: memref<1x256xf32, #tpu.memory_space<vmem>>, %arg4: memref<64x128xf32, #tpu.memory_space<vmem>>) attributes {dimension_semantics = [#tpu.dimension_semantics<parallel>], iteration_bounds = array<i64: 1>, scalar_prefetch = 0 : i64, scratch_operands = 0 : i64, tpu.core_type = #tpu.core_type<tc>, window_params = [{transform_indices = @transform_0, window_bounds = array<i64: 64, 16>}, {pipeline_mode = #tpu.pipeline_mode<synchronous>, transform_indices = @transform_1, window_bounds = array<i64: 16, 256>}, {pipeline_mode = #tpu.pipeline_mode<synchronous>, transform_indices = @transform_2, window_bounds = array<i64: 1, 256>}, {transform_indices = @transform_3, window_bounds = array<i64: 64, 128>}]} {
    %c0 = arith.constant 0 : index
    %c0_0 = arith.constant 0 : index
    %0 = vector.load %arg1[%c0, %c0_0] : memref<64x16xf32, #tpu.memory_space<vmem>>, vector<64x16xf32>
    %c0_1 = arith.constant 0 : index
    %c0_2 = arith.constant 0 : index
    %1 = vector.load %arg2[%c0_1, %c0_2] : memref<16x256xf32, #tpu.memory_space<vmem>>, vector<16x256xf32>
    %cst = arith.constant dense<0.000000e+00> : vector<64x256xf32>
    %2 = tpu.matmul %0, %1, %cst {dimension_numbers = #tpu.dot_dimension_numbers<[1], [0], [0], [1], [0, 0, 1, 1], [], []>} : vector<64x16xf32>, vector<16x256xf32>, vector<64x256xf32> -> vector<64x256xf32>
    %c0_3 = arith.constant 0 : index
    %c0_4 = arith.constant 0 : index
    %3 = vector.load %arg3[%c0_3, %c0_4] : memref<1x256xf32, #tpu.memory_space<vmem>>, vector<1x256xf32>
    %4 = vector.broadcast %3 : vector<1x256xf32> to vector<64x256xf32>
    %5 = arith.addf %2, %4 : vector<64x256xf32>
    %6 = vector.extract_strided_slice %5 {offsets = [0, 0], sizes = [64, 128], strides = [1, 1]} : vector<64x256xf32> to vector<64x128xf32>
    %7 = vector.extract_strided_slice %5 {offsets = [0, 128], sizes = [64, 128], strides = [1, 1]} : vector<64x256xf32> to vector<64x128xf32>
    %8 = math.cos %6 : vector<64x128xf32>
    %9 = arith.mulf %7, %7 : vector<64x128xf32>
    %cst_5 = arith.constant 0.000000e+00 : f32
    %10 = vector.broadcast %cst_5 : f32 to vector<64x128xf32>
    %11 = arith.subf %10, %9 : vector<64x128xf32>
    %12 = math.exp %11 : vector<64x128xf32>
    %13 = arith.mulf %8, %12 : vector<64x128xf32>
    %c0_6 = arith.constant 0 : index
    %c0_7 = arith.constant 0 : index
    %14 = vector.load %arg4[%c0_6, %c0_7] : memref<64x128xf32, #tpu.memory_space<vmem>>, vector<64x128xf32>
    tpu.vector_store %arg4[%c0_6, %c0_7], %13 {strides = array<i32>} : memref<64x128xf32, #tpu.memory_space<vmem>>, vector<64x128xf32>,
    return
  }
  func.func @transform_0(%arg0: i32) -> (i32, i32) {
    %c0_i32 = arith.constant 0 : i32
    %c0_i32_0 = arith.constant 0 : i32
    return %arg0, %c0_i32 : i32, i32
  }
  func.func @transform_1(%arg0: i32) -> (i32, i32) {
    %c0_i32 = arith.constant 0 : i32
    %c0_i32_0 = arith.constant 0 : i32
    %c0_i32_1 = arith.constant 0 : i32
    return %c0_i32, %c0_i32_0 : i32, i32
  }
  func.func @transform_2(%arg0: i32) -> (i32, i32) {
    %c0_i32 = arith.constant 0 : i32
    %c0_i32_0 = arith.constant 0 : i32
    %c0_i32_1 = arith.constant 0 : i32
    return %c0_i32, %c0_i32_0 : i32, i32
  }
  func.func @transform_3(%arg0: i32) -> (i32, i32) {
    %c0_i32 = arith.constant 0 : i32
    %c0_i32_0 = arith.constant 0 : i32
    return %arg0, %c0_i32 : i32, i32
  }
}

</mosaic_0001>

<bundles_post_ra>
// kernel: tpu_custom_call.1
= control target key start
LH: loop header
LB: loop body
LE: loop exit
PB: predicated region body
PF: predicated region fallthrough
CT: control target
= control target key end

     0   :  { %v1225_v5 = vmov 0.0   ;;  %vm39_vm0 = vcmask 130048   ;;  %s2034_s0 = inlined_call_operand.vmem [shape: f32[64,16], index: 0, kind: input, shape index: {}]   ;;  %s2035_s1 = inlined_call_operand.vmem [shape: f32[16,256], index: 1, kind: input, shape index: {}]   ;;  %s2036_s2 = inlined_call_operand.vmem [shape: f32[1,256], index: 2, kind: input, shape index: {}]   ;;  %s2037_s3 = inlined_call_operand.hbm [shape: f32[64,128], index: 3, kind: output, shape index: {}]  }
   0x1   :  { %v24_v0 = vld [vmem:[%s2035_s1 + $0x8] sm:$0xff]  ;;  %v26_v1 = vld [vmem:[%s2035_s1 + $0x18] sm:$0xff]  ;;  %v23_v2 = vld [vmem:[%s2035_s1] sm:$0xff]  ;;  %128 = vmatprep.mubr.f32.mxu0 %v1225_v5  ;;  %152 = vmatprep.mubr.f32.mxu1 %v1225_v5 }
   0x2   :  { %v1105_v3 = vpack.c.bf16 %v26_v1, %v24_v0  ;;  %v25_v4 = vld [vmem:[%s2035_s1 + $0x10] sm:$0xff]  ;;  %v15_v7 = vld [vmem:[%s2034_s0] sm:$0xff] }
   0x3   :  { %v1107_v6 = vpack.c.bf16 %v25_v4, %v23_v2  ;;  %v19_v8 = vld [vmem:[%s2034_s0 + $0x20] sm:$0xff] }
   0x4   :  { %1106 = vmatprep.subr.bf16.mxu0 %v1105_v3  ;;  %1109 = vmatprep.subr.bf16.mxu1 %v1105_v3 }
   0x5   :  { %1108 = vmatpush1.bf16.msra.mxu0 %v1107_v6  ;;  %1110 = vmatpush1.bf16.msra.mxu1 %v1107_v6 }
   0x6   :  { %8 = vsyncpa [#allocation3], 0  ;;  %v16_v9 = vld [vmem:[%s2034_s0 + $0x8] sm:$0xff]  ;;  %v17_v11 = vld [vmem:[%s2034_s0 + $0x10] sm:$0xff]  ;;  %v29_v15 = vlaneseq  ;;  %v1226_v0 = vmov 683565275  }
   0x7   :  { %v20_v10 = vld [vmem:[%s2034_s0 + $0x28] sm:$0xff]  ;;  %v21_v12 = vld [vmem:[%s2034_s0 + $0x30] sm:$0xff]  ;;  %v18_v13 = vld [vmem:[%s2034_s0 + $0x18] sm:$0xff]  ;;  %v1227_v4 = vmov 2475754826  }
   0x8   :  { %1065 = vmatmul.mubr.msk.f32.vlgmr.msra.gmra.mrb[0].mxu0 %vm39_vm0, %v15_v7  ;;  %1069 = vmatmul.mubr.msk.f32.vlgmr.msra.gmra.mrb[0].mxu1 %vm39_vm0, %v19_v8  ;;  %v22_v14 = vld [vmem:[%s2034_s0 + $0x38] sm:$0xff]  ;;  %v30_v16 = vshrl.u32 %v29_v15, 7  ;;  %v27_v18 = vld [vmem:[%s2036_s2] sm:$0x3]  ;;  %v1228_v6 = vmov 2131351028  }
   0x9   :  { %134 = vmatprep.mubr.f32.mxu0 %v1225_v5  ;;  %158 = vmatprep.mubr.f32.mxu1 %v1225_v5  ;;  %v1229_v8 = vmov 2102212464   ;;  %s1232_s0 = smov [#allocation2]  }
   0xa   :  { %v31_v17 = vsub.s32 0, %v30_v16  ;;  %v35_v30 = vsub.s32 1, %v30_v16  ;;  %s1054_s2 = sshll.u32 %s1232_s0, 4  ;;  %s1055_s2 = int_to_ptr.vmem [resolvable:$true] %s1054_s2 }
   0xb   :  { %s1201_s10 = scalar_lea.vmem %s1055_s2, 1024  ;;  %p1206_p1 = scmp.lt.s32.totalorder %s1055_s2, %s1055_s2 }
   0xc   :  { %1066 = vmatmul.mubr.msk.f32.gmra.mrb[2].mxu0 %vm39_vm0, %v16_v9  ;;  %1070 = vmatmul.mubr.msk.f32.gmra.mrb[2].mxu1 %vm39_vm0, %v20_v10  ;;  %v1302_v19 = vrot.slane %v27_v18, %v31_v17  ;;  %v1327_v42 = vrot.slane %v27_v18, %v35_v30  ;;  %v1230_v10 = vmov 920167782   ;;  %v1231_v18 = vmov 1326507024   ;;  %p1202_p0 = scmp.ne.s32.totalorder %s1055_s2, %s1201_s10  ;;  %p1207_p2 = scmp.lt.s32.totalorder %s1201_s10, %s1201_s10 }
   0xd   :  { %140 = vmatprep.mubr.f32.mxu0 %v1225_v5  ;;  %164 = vmatprep.mubr.f32.mxu1 %v1225_v5 }
   0xe   :  { %p1208_p3 = por %p1207_p2, %p1206_p1 }
  0x10   :  { %1067 = vmatmul.mubr.msk.f32.gmra.mrb[4].mxu0 %vm39_vm0, %v17_v11  ;;  %1071 = vmatmul.mubr.msk.f32.gmra.mrb[4].mxu1 %vm39_vm0, %v21_v12  ;;  %p1209_p4 = pnand %p1208_p3, %p1202_p0 }
  0x11   :  { %146 = vmatprep.mubr.f32.mxu0 %v1225_v5  ;;  %170 = vmatprep.mubr.f32.mxu1 %v1225_v5 }
  0x14   :  { %1068 = vmatmul.mubr.msk.f32.gmra.mrb[6].mxu0 %vm39_vm0, %v18_v13  ;;  %1072 = vmatmul.mubr.msk.f32.gmra.mrb[6].mxu1 %vm39_vm0, %v22_v14 }
  0xdb   :  { %v130_v20 = vpop.f32.mrb[0].mxu0  ;;  %v154_v21 = vpop.f32.mrb[0].mxu1 }
  0xdc   :  { %v1305_v22 = vadd.f32 %v130_v20, %v1302_v19  ;;  %v1308_v23 = vadd.f32 %v154_v21, %v1302_v19  ;;  %v132_v24 = vpop.f32.mrb[1].mxu0  ;;  %v156_v25 = vpop.f32.mrb[1].mxu1 }
  0xdd   :  { %v1339_v53 = vadd.f32 %v132_v24, %v1327_v42  ;;  %v1344_v58 = vadd.f32 %v156_v25, %v1327_v42 }
  0xde   :  { %v177_v26 = vand.u32 2147483647, %v1305_v22  ;;  %v180_v27 = vand.u32 2139095040, %v1305_v22  ;;  %v589_v28 = vand.u32 2147483647, %v1308_v23  ;;  %v592_v29 = vand.u32 2139095040, %v1308_v23 }
  0xdf   :  { %v136_v31 = vpop.f32.mrb[2].mxu0  ;;  %v1314_v32 = vpop.f32.mrb[2].mxu1  ;;  %vm179_vm15 = vcmp.lt.s32.totalorder %v1305_v22, 0 }
  0xe0   :  { %v181_v33 = vshrl.u32 %v180_v27, 23  ;;  %v1316_v34 = vpop.f32.mrb[3].mxu0  ;;  %v184_v35 = vand.u32 8388607, %v177_v26  ;;  %v593_v36 = vshrl.u32 %v592_v29, 23  ;;  %v1322_v38 = vpop.f32.mrb[3].mxu1  ;;  %v1325_v40 = vadd.f32 %v136_v31, %v1302_v19 }
  0xe1   :  { %v596_v37 = vand.u32 8388607, %v589_v28 }
  0xe2   :  { %v1073_v39 = vadd.s32 4294967169, %v181_v33  ;;  %v1089_v41 = vadd.s32 4294967169, %v593_v36  ;;  %v185_v46 = vor.u32 8388608, %v184_v35  ;;  %v283_v50 = vand.u32 2139095040, %v1325_v40 }
  0xe3   :  { %v1329_v43 = vpop.f32.mrb[4].mxu0  ;;  %v1331_v44 = vpop.f32.mrb[4].mxu1  ;;  %v597_v47 = vor.u32 8388608, %v596_v37  ;;  %v280_v61 = vand.u32 2147483647, %v1325_v40 }
  0xe4   :  { %v187_v45 = vadd.s32 1, %v1073_v39  ;;  %v599_v48 = vadd.s32 1, %v1089_v41  ;;  %v1333_v49 = vpop.f32.mrb[5].mxu0  ;;  %v1336_v51 = vpop.f32.mrb[5].mxu1  ;;  %v1346_v59 = vshll.u32 %v185_v46, 8  ;;  %v1351_v62 = vshrl.u32 %v283_v50, 23 }
  0xe5   :  { %v1348_v60 = vshll.u32 %v597_v47, 8 }
  0xe6   :  { %vm188_vm1 = vcmp.gt.s32.totalorder %v187_v45, 0  ;;  %vm600_vm2 = vcmp.gt.s32.totalorder %v599_v48, 0 }
  0xe7   :  { %v189_v52 = vsel %vm188_vm1, %v187_v45, 0  ;;  %v1341_v54 = vpop.f32.mrb[6].mxu0  ;;  %v601_v57 = vsel %vm600_vm2, %v599_v48, 0  ;;  %v1363_v15 = vpop.f32.mrb[6].mxu1 }
  0xe8   :  { %v190_v55 = vshrl.u32 %v189_v52, 5  ;;  %v191_v56 = vand.u32 31, %v189_v52  ;;  %v1354_v2 = vshrl.u32 %v601_v57, 5  ;;  %v603_v3 = vand.u32 31, %v601_v57 }
  0xea   :  { %v192_v63 = vsub.s32 32, %v191_v56  ;;  %v194_v1 = vshll.u32 %v1226_v0, %v191_v56  ;;  %v197_v5 = vshll.u32 %v1227_v4, %v191_v56  ;;  %v200_v7 = vshll.u32 %v1228_v6, %v191_v56 }
  0xeb   :  { %v203_v9 = vshll.u32 %v1229_v8, %v191_v56  ;;  %v206_v11 = vshll.u32 %v1230_v10, %v191_v56  ;;  %vm209_vm3 = vcmp.lt.s32.totalorder %v190_v55, 1  ;;  %vm210_vm4 = vcmp.lt.s32.totalorder %v190_v55, 2 }
  0xec   :  { %v195_v12 = vshrl.u32 %v1227_v4, %v192_v63  ;;  %v198_v13 = vshrl.u32 %v1228_v6, %v192_v63  ;;  %v201_v14 = vshrl.u32 %v1229_v8, %v192_v63  ;;  %v193_v16 = vshrl.u32 %v1226_v0, %v192_v63 }
  0xed   :  { %v204_v17 = vshrl.u32 %v1230_v10, %v192_v63  ;;  %v207_v20 = vshrl.u32 %v1231_v18, %v192_v63  ;;  %v604_v27 = vsub.s32 32, %v603_v3  ;;  %vm211_vm5 = vcmp.lt.s32.totalorder %v190_v55, 3 }
  0xee   :  { %v196_v21 = vor.u32 %v195_v12, %v194_v1  ;;  %v199_v24 = vor.u32 %v198_v13, %v197_v5  ;;  %v202_v25 = vor.u32 %v201_v14, %v200_v7  ;;  %vm212_vm6 = vcmp.lt.s32.totalorder %v190_v55, 4 }
  0xef   :  { %v205_v29 = vor.u32 %v204_v17, %v203_v9  ;;  %v208_v30 = vor.u32 %v207_v20, %v206_v11  ;;  %v606_v45 = vshll.u32 %v1226_v0, %v603_v3  ;;  %v607_v48 = vshrl.u32 %v1227_v4, %v604_v27 }
  0xf0   :  { %v213_v31 = vsel %vm209_vm3, %v193_v16, %v196_v21  ;;  %v214_v33 = vsel %vm212_vm6, %v202_v25, 2102212464  ;;  %v217_v35 = vsel %vm209_vm3, %v196_v21, %v199_v24  ;;  %v221_v36 = vsel %vm209_vm3, %v199_v24, %v202_v25 }
  0xf1   :  { %v215_v37 = vsel %vm211_vm5, %v199_v24, %v214_v33  ;;  %v218_v39 = vsel %vm212_vm6, %v205_v29, 920167782  ;;  %v222_v41 = vsel %vm212_vm6, %v208_v30, 1326507024  ;;  %v609_v50 = vshll.u32 %v1227_v4, %v603_v3 }
  0xf2   :  { %v219_v46 = vsel %vm211_vm5, %v202_v25, %v218_v39  ;;  %v223_v47 = vsel %vm211_vm5, %v205_v29, %v222_v41  ;;  %v216_v52 = vsel %vm210_vm4, %v213_v31, %v215_v37  ;;  %v610_v63 = vshrl.u32 %v1228_v6, %v604_v27 }
  0xf3   :  { %v220_v56 = vsel %vm210_vm4, %v217_v35, %v219_v46  ;;  %v224_v57 = vsel %vm210_vm4, %v221_v36, %v223_v47  ;;  %v608_v11 = vor.u32 %v607_v48, %v606_v45  ;;  %v612_v13 = vshll.u32 %v1228_v6, %v603_v3 }
  0xf4   :  { %v1379_v1 = vmul.u32.u64.low %v1346_v59, %v224_v57  ;;  %v1380_v5 = vmul.u32.u64.high %v1346_v59, %v224_v57, %v1379_v1  ;;  %v1383_v7 = vmul.u32.u64.low %v1346_v59, %v220_v56  ;;  %v1384_v9 = vmul.u32.u64.high %v1346_v59, %v220_v56, %v1383_v7 }
  0xf5   :  { %v611_v12 = vor.u32 %v610_v63, %v609_v50  ;;  %v613_v14 = vshrl.u32 %v1229_v8, %v604_v27  ;;  %v605_v55 = vshrl.u32 %v1226_v0, %v604_v27  ;;  %v615_v16 = vshll.u32 %v1229_v8, %v603_v3 }
  0xf6   :  { %v616_v17 = vshrl.u32 %v1230_v10, %v604_v27  ;;  %v619_v20 = vshrl.u32 %v1231_v18, %v604_v27  ;;  %v232_v21 = vmul.u32 %v1346_v59, %v216_v52  ;;  %v618_v25 = vshll.u32 %v1230_v10, %v603_v3 }
  0xf7   :  { %v614_v24 = vor.u32 %v613_v14, %v612_v13  ;;  %vm621_vm7 = vcmp.lt.s32.totalorder %v1354_v2, 1  ;;  %vm234_vm8 = vc.u32 %v1380_v5, %v1383_v7  ;;  %v235_v29 = vadd.s32 1, %v1384_v9 }
  0xf8   :  { %v617_v30 = vor.u32 %v616_v17, %v615_v16  ;;  %vm622_vm9 = vcmp.lt.s32.totalorder %v1354_v2, 2  ;;  %v620_v31 = vor.u32 %v619_v20, %v618_v25  ;;  %vm623_vm10 = vcmp.lt.s32.totalorder %v1354_v2, 3 }
  0xf9   :  { %vm624_vm11 = vcmp.lt.s32.totalorder %v1354_v2, 4  ;;  %v629_v27 = vsel %vm621_vm7, %v608_v11, %v611_v12  ;;  %v236_v59 = vsel %vm234_vm8, %v235_v29, %v1384_v9  ;;  %v633_v35 = vsel %vm621_vm7, %v611_v12, %v614_v24 }
  0xfa   :  { %v626_v33 = vsel %vm624_vm11, %v614_v24, 2102212464  ;;  %v630_v3 = vsel %vm624_vm11, %v617_v30, 920167782  ;;  %v237_v36 = vadd.s32 %v236_v59, %v232_v21  ;;  %v625_v37 = vsel %vm621_vm7, %v605_v55, %v608_v11 }
  0xfb   :  { %v631_v39 = vsel %vm623_vm10, %v614_v24, %v630_v3  ;;  %v634_v41 = vsel %vm624_vm11, %v620_v31, 1326507024  ;;  %v627_v45 = vsel %vm623_vm10, %v611_v12, %v626_v33  ;;  %v1077_v48 = vadd.s32 4294967169, %v1351_v62 }
  0xfc   :  { %v632_v46 = vsel %vm622_vm9, %v629_v27, %v631_v39  ;;  %v635_v47 = vsel %vm623_vm10, %v617_v30, %v634_v41  ;;  %v238_v50 = vadd.s32 536870912, %v237_v36  ;;  %v1001_v9 = vmul.f32 %v1339_v53, %v1339_v53 }
  0xfd   :  { %v636_v52 = vsel %vm622_vm9, %v633_v35, %v635_v47  ;;  %v1409_v56 = vmul.u32.u64.low %v1348_v60, %v632_v46  ;;  %v1410_v57 = vmul.u32.u64.high %v1348_v60, %v632_v46, %v1409_v56  ;;  %v290_v11 = vadd.s32 1, %v1077_v48 }
  0xfe   :  { %v1413_v63 = vmul.u32.u64.low %v1348_v60, %v636_v52  ;;  %v1414_v1 = vmul.u32.u64.high %v1348_v60, %v636_v52, %v1413_v63  ;;  %v1418_v12 = vshrl.u32 %v238_v50, 30  ;;  %v628_v62 = vsel %vm622_vm9, %v625_v37, %v627_v45 }
  0xff   :  { %v287_v13 = vand.u32 8388607, %v280_v61  ;;  %vm291_vm12 = vcmp.gt.s32.totalorder %v290_v11, 0  ;;  %v647_v55 = vadd.s32 1, %v1410_v57  ;;  %v1428_v16 = vmul.f32 %v1344_v58, %v1344_v58  ;;  %v1439_v58 = vpop.f32.mrb[7].mxu0 }
 0x100   :  { %v240_v14 = vshll.u32 %v1418_v12, 30  ;;  %v292_v17 = vsel %vm291_vm12, %v290_v11, 0  ;;  %v644_v53 = vmul.u32 %v1348_v60, %v628_v62  ;;  %vm646_vm13 = vc.u32 %v1414_v1, %v1409_v56 }
 0x101   :  { %v1009_v20 = vsub.f32 0.0, %v1001_v9  ;;  %v294_v2 = vand.u32 31, %v292_v17  ;;  %v648_v24 = vsel %vm646_vm13, %v647_v55, %v1410_v57  ;;  %v288_v25 = vor.u32 8388608, %v287_v13 }
 0x102   :  { %v1432_v21 = vsub.s32 %v237_v36, %v240_v14  ;;  %v1437_v29 = vadd.f32 %v1314_v32, %v1302_v19  ;;  %v649_v30 = vadd.s32 %v648_v24, %v644_v53  ;;  %v1013_v33 = vsub.f32 0.0, %v1428_v16 }
 0x103   :  { %v295_v31 = vsub.s32 32, %v294_v2  ;;  %v1442_v59 = vmul.f32 1.442695, %v1009_v20  ;;  %v233_v3 = vadd.s32 %v1383_v7, %v1380_v5  ;;  %v1448_v36 = vshll.u32 %v288_v25, 8 }
 0x104   :  { %v243_v27 = vsub.s32 0, %v1432_v21  ;;  %v650_v60 = vadd.s32 536870912, %v649_v30  ;;  %v692_v32 = vand.u32 2147483647, %v1437_v29  ;;  %v263_v37 = vsub.s32 4, %v1418_v12 }
 0x105   :  { %v304_v41 = vshrl.u32 %v1229_v8, %v295_v31  ;;  %v695_v45 = vand.u32 2139095040, %v1437_v29  ;;  %v1457_v47 = vadd.s32 %v1409_v56, %v1414_v1  ;;  %v298_v5 = vshrl.u32 %v1227_v4, %v295_v31 }
 0x106   :  { %v1074_v35 = vmin.u32 %v243_v27, %v1432_v21  ;;  %v1452_v39 = vshrl.u32 %v650_v60, 30  ;;  %v301_v7 = vshrl.u32 %v1228_v6, %v295_v31  ;;  %v303_v50 = vshll.u32 %v1228_v6, %v294_v2 }
 0x107   :  { %v307_v52 = vshrl.u32 %v1230_v10, %v295_v31  ;;  %v310_v57 = vshrl.u32 %v1231_v18, %v295_v31  ;;  %v293_v9 = vshrl.u32 %v292_v17, 5  ;;  %v297_v11 = vshll.u32 %v1226_v0, %v294_v2 }
 0x108   :  { %v245_v46 = vclz %v1074_v35  ;;  %v652_v48 = vshll.u32 %v1452_v39, 30  ;;  %v300_v62 = vshll.u32 %v1227_v4, %v294_v2  ;;  %v305_v1 = vor.u32 %v304_v41, %v303_v50 }
 0x109   :  { %v306_v13 = vshll.u32 %v1229_v8, %v294_v2  ;;  %v309_v14 = vshll.u32 %v1230_v10, %v294_v2  ;;  %v296_v55 = vshrl.u32 %v1226_v0, %v295_v31  ;;  %v299_v53 = vor.u32 %v298_v5, %v297_v11 }
 0x10a   :  { %v1075_v63 = vadd.s32 4294967294, %v245_v46  ;;  %v1467_v56 = vsub.s32 %v649_v30, %v652_v48  ;;  %v302_v20 = vor.u32 %v301_v7, %v300_v62  ;;  %vm312_vm0 = vcmp.lt.s32.totalorder %v293_v9, 1  ;;  %v1477_v7 = vpop.f32.mrb[7].mxu1 }
 0x10b   :  { %v308_v25 = vor.u32 %v307_v52, %v306_v13  ;;  %v311_v27 = vor.u32 %v310_v57, %v309_v14  ;;  %vm315_vm1 = vcmp.lt.s32.totalorder %v293_v9, 4  ;;  %vm313_vm2 = vcmp.lt.s32.totalorder %v293_v9, 2 }
 0x10c   :  { %vm1076_vm14 = vcmp.lt.s32.totalorder %v1075_v63, 0  ;;  %v655_v17 = vsub.s32 0, %v1467_v56  ;;  %vm314_vm3 = vcmp.lt.s32.totalorder %v293_v9, 3  ;;  %v317_v2 = vsel %vm315_vm1, %v305_v1, 2102212464 }
 0x10d   :  { %v248_v24 = vsel %vm1076_vm14, 0, %v1075_v63  ;;  %v320_v5 = vsel %vm312_vm0, %v299_v53, %v302_v20  ;;  %vm1481_vm4 = vcmp.le.f32.partialorder %v177_v26, 0.7853982  ;;  %v321_v52 = vsel %vm315_vm1, %v308_v25, 920167782 }
 0x10e   :  { %v249_v60 = vsub.s32 32, %v248_v24  ;;  %v253_v30 = vsub.s32 4294967266, %v248_v24  ;;  %v1090_v35 = vmin.u32 %v655_v17, %v1467_v56  ;;  %v250_v31 = vshll.u32 %v1432_v21, %v248_v24 }
 0x10f   :  { %v324_v57 = vsel %vm312_vm0, %v302_v20, %v305_v1  ;;  %v325_v63 = vsel %vm315_vm1, %v311_v27, 1326507024  ;;  %v322_v21 = vsel %vm314_vm3, %v305_v1, %v321_v52  ;;  %vm591_vm5 = vcmp.lt.s32.totalorder %v1308_v23, 0 }
 0x110   :  { %v251_v41 = vshrl.u32 %v233_v3, %v249_v60  ;;  %v254_v46 = vadd.s32 127, %v253_v30  ;;  %v657_v50 = vclz %v1090_v35  ;;  %v326_v3 = vsel %vm314_vm3, %v308_v25, %v325_v63 }
 0x111   :  { %v316_v14 = vsel %vm312_vm0, %v296_v55, %v299_v53  ;;  %v323_v26 = vsel %vm313_vm2, %v320_v5, %v322_v21  ;;  %v327_v24 = vsel %vm313_vm2, %v324_v57, %v326_v3  ;;  %v318_v60 = vsel %vm314_vm3, %v302_v20, %v317_v2 }
 0x112   :  { %v252_v11 = vor.u32 %v251_v41, %v250_v31  ;;  %v255_v62 = vshll.u32 %v254_v46, 23  ;;  %v1091_v13 = vadd.s32 4294967294, %v657_v50  ;;  %v696_v35 = vshrl.u32 %v695_v45, 23 }
 0x113   :  { %v1494_v27 = vmul.u32.u64.low %v1448_v36, %v327_v24  ;;  %v1495_v30 = vmul.u32.u64.high %v1448_v36, %v327_v24, %v1494_v27  ;;  %v1498_v1 = vmul.u32.u64.low %v1448_v36, %v323_v26  ;;  %v1499_v25 = vmul.u32.u64.high %v1448_v36, %v323_v26, %v1498_v1 }
 0x114   :  { %v256_v17 = vor.u32 4788187, %v255_v62  ;;  %vm1092_vm6 = vcmp.lt.s32.totalorder %v1091_v13, 0  ;;  %v259_v55 = vcvt.s32.f32 %v252_v11  ;;  %v264_v53 = vsel %vm179_vm15, %v263_v37, %v1418_v12 }
 0x115   :  { %vm1509_vm7 = vcmp.le.f32.partialorder %v589_v28, 0.7853982  ;;  %v660_v2 = vsel %vm1092_vm6, 0, %v1091_v13  ;;  %v319_v5 = vsel %vm313_vm2, %v316_v14, %v318_v60  ;;  %v1093_v45 = vadd.s32 4294967169, %v696_v35 }
 0x116   :  { %v257_v31 = vand.u32 2147483647, %v256_v17  ;;  %v661_v41 = vsub.s32 32, %v660_v2  ;;  %v665_v46 = vsub.s32 4294967266, %v660_v2  ;;  %v662_v52 = vshll.u32 %v1467_v56, %v660_v2 }
 0x117   :  { %v675_v57 = vsub.s32 4, %v1452_v39  ;;  %vm337_vm8 = vc.u32 %v1495_v30, %v1498_v1  ;;  %v338_v37 = vadd.s32 1, %v1499_v25  ;;  %v702_v63 = vadd.s32 1, %v1093_v45 }
 0x118   :  { %v260_v50 = vmul.f32 %v259_v55, %v257_v31  ;;  %v663_v12 = vshrl.u32 %v1457_v47, %v661_v41  ;;  %v666_v28 = vadd.s32 127, %v665_v46  ;;  %v266_v9 = vsel %vm1481_vm4, 0, %v264_v53 }
 0x119   :  { %v335_v62 = vmul.u32 %v1448_v36, %v319_v5  ;;  %v699_v56 = vand.u32 8388607, %v692_v32  ;;  %v339_v13 = vsel %vm337_vm8, %v338_v37, %v1499_v25  ;;  %vm703_vm9 = vcmp.gt.s32.totalorder %v702_v63, 0 }
 0x11a   :  { %v261_v11 = vxor.u32 2147483648, %v260_v50  ;;  %v664_v21 = vor.u32 %v663_v12, %v662_v52  ;;  %v667_v3 = vshll.u32 %v666_v28, 23  ;;  %v676_v14 = vsel %vm591_vm5, %v675_v57, %v1452_v39 }
 0x11b   :  { %v340_v26 = vadd.s32 %v339_v13, %v335_v62  ;;  %v704_v24 = vsel %vm703_vm9, %v702_v63, 0  ;;  %v1534_v17 = vand.u32 3, %v266_v9  ;;  %v1025_v27 = vmul.f32 1.442695, %v1013_v33 }
 0x11c   :  { %v262_v47 = vsel %vm179_vm15, %v261_v11, %v260_v50  ;;  %v668_v60 = vor.u32 4788187, %v667_v3  ;;  %v700_v35 = vor.u32 8388608, %v699_v56  ;;  %v706_v31 = vand.u32 31, %v704_v24 }
 0x11d   :  { %v265_v36 = vsel %vm1481_vm4, %v1305_v22, %v262_v47  ;;  %v341_v25 = vadd.s32 536870912, %v340_v26  ;;  %v671_v53 = vcvt.s32.f32 %v664_v21  ;;  %v678_v39 = vsel %vm1509_vm7, 0, %v676_v14 }
 0x11e   :  { %1153 = vcosq.f32 %v265_v36  ;;  %v669_v55 = vand.u32 2147483647, %v668_v60  ;;  %v707_v2 = vsub.s32 32, %v706_v31  ;;  %v1545_v16 = vadd.f32 %v1316_v34, %v1327_v42 }
 0x11f   :  { %1155 = vsinq.f32 %v265_v36  ;;  %v1541_v48 = vshrl.u32 %v341_v25, 30  ;;  %vm275_vm10 = vcmp.eq.s32.totalorder %v1534_v17, 2  ;;  %v1548_v33 = vand.u32 3, %v678_v39 }
 0x120   :  { %1157 = vpow2.f32 %v1442_v59  ;;  %v672_v41 = vmul.f32 %v671_v53, %v669_v55  ;;  %v710_v5 = vshrl.u32 %v1227_v4, %v707_v2  ;;  %v1552_v45 = vshll.u32 %v700_v35, 8 }
 0x121   :  { %1159 = vpow2.f32 %v1025_v27  ;;  %v343_v46 = vshll.u32 %v1541_v48, 30  ;;  %vm272_vm11 = vcmp.eq.s32.totalorder %v1534_v17, 0  ;;  %v713_v50 = vshrl.u32 %v1228_v6, %v707_v2 }
 0x122   :  { %v673_v59 = vxor.u32 2147483648, %v672_v41  ;;  %v716_v52 = vshrl.u32 %v1229_v8, %v707_v2  ;;  %v719_v34 = vshrl.u32 %v1230_v10, %v707_v2  ;;  %vm271_vm12 = vcmp.lt.s32.totalorder %v1534_v17, 2 }
 0x123   :  { %v1559_v57 = vsub.s32 %v340_v26, %v343_v46  ;;  %v1561_v12 = vshrl.u32 %v704_v24, 5  ;;  %v715_v28 = vshll.u32 %v1228_v6, %v706_v31  ;;  %v722_v37 = vshrl.u32 %v1231_v18, %v707_v2 }
 0x124   :  { %vm269_vm13 = vweird.f32 %v1305_v22  ;;  %v674_v63 = vsel %vm591_vm5, %v673_v59, %v672_v41  ;;  %v709_v11 = vshll.u32 %v1226_v0, %v706_v31  ;;  %v712_v9 = vshll.u32 %v1227_v4, %v706_v31 }
 0x125   :  { %v718_v62 = vshll.u32 %v1229_v8, %v706_v31  ;;  %v677_v56 = vsel %vm1509_vm7, %v1308_v23, %v674_v63  ;;  %v346_v21 = vsub.s32 0, %v1559_v57  ;;  %v717_v3 = vor.u32 %v716_v52, %v715_v28 }
 0x126   :  { %v721_v13 = vshll.u32 %v1230_v10, %v706_v31  ;;  %1161 = vcosq.f32 %v677_v56  ;;  %v711_v47 = vor.u32 %v710_v5, %v709_v11  ;;  %v714_v14 = vor.u32 %v713_v50, %v712_v9 }
 0x127   :  { %v720_v26 = vor.u32 %v719_v34, %v718_v62  ;;  %1163 = vsinq.f32 %v677_v56  ;;  %v1078_v36 = vmin.u32 %v346_v21, %v1559_v57  ;;  %vm724_vm14 = vcmp.lt.s32.totalorder %v1561_v12, 1 }
 0x128   :  { %v1154_v24 = vpop.eup %1153  ;;  %v723_v60 = vor.u32 %v722_v37, %v721_v13  ;;  %v708_v20 = vshrl.u32 %v1226_v0, %v707_v2  ;;  %vm725_vm15 = vcmp.lt.s32.totalorder %v1561_v12, 2  ;;  %vm727_vm0 = vcmp.lt.s32.totalorder %v1561_v12, 4 }
 0x129   :  { %v1156_v27 = vpop.eup %1155  ;;  %v276_v25 = vxor.u32 2147483648, %v1154_v24  ;;  %v348_v55 = vclz %v1078_v36  ;;  %vm726_vm1 = vcmp.lt.s32.totalorder %v1561_v12, 3  ;;  %v729_v53 = vsel %vm727_vm0, %v717_v3, 2102212464 }
 0x12a   :  { %v1158_v35 = vpop.eup %1157  ;;  %v273_v31 = vxor.u32 2147483648, %v1156_v27  ;;  %v732_v46 = vsel %vm724_vm14, %v711_v47, %v714_v14  ;;  %v733_v5 = vsel %vm727_vm0, %v720_v26, 920167782  ;;  %v736_v2 = vsel %vm724_vm14, %v714_v14, %v717_v3 }
 0x12b   :  { %v1160_v39 = vpop.eup %1159  ;;  %v277_v41 = vsel %vm275_vm10, %v276_v25, %v1156_v27  ;;  %v1079_v50 = vadd.s32 4294967294, %v348_v55  ;;  %v734_v52 = vsel %vm726_vm1, %v717_v3, %v733_v5  ;;  %v737_v34 = vsel %vm727_vm0, %v723_v60, 1326507024 }
 0x12c   :  { %v274_v59 = vsel %vm272_vm11, %v1154_v24, %v273_v31  ;;  %vm683_vm2 = vcmp.lt.s32.totalorder %v1548_v33, 2  ;;  %v728_v37 = vsel %vm724_vm14, %v708_v20, %v711_v47  ;;  %v730_v63 = vsel %vm726_vm1, %v714_v14, %v729_v53 }
 0x12d   :  { %v278_v28 = vsel %vm271_vm12, %v274_v59, %v277_v41  ;;  %v738_v11 = vsel %vm726_vm1, %v720_v26, %v737_v34  ;;  %vm681_vm3 = vweird.f32 %v1308_v23  ;;  %vm1080_vm4 = vcmp.lt.s32.totalorder %v1079_v50, 0 }
 0x12e   :  { %v279_v9 = vsel %vm269_vm13, nan, %v278_v28  ;;  %v735_v62 = vsel %vm725_vm15, %v732_v46, %v734_v52  ;;  %v739_v17 = vsel %vm725_vm15, %v736_v2, %v738_v11  ;;  %v351_v21 = vsel %vm1080_vm4, 0, %v1079_v50 }
 0x12f   :  { %v1033_v56 = vmul.f32 %v1158_v35, %v279_v9  ;;  %v1603_v3 = vmul.u32.u64.low %v1552_v45, %v739_v17  ;;  %v1604_v13 = vmul.u32.u64.high %v1552_v45, %v739_v17, %v1603_v3  ;;  %vm684_vm5 = vcmp.eq.s32.totalorder %v1548_v33, 0 }
 0x130   :  { %vm282_vm6 = vcmp.lt.s32.totalorder %v1325_v40, 0  ;;  %v336_v22 = vadd.s32 %v1498_v1, %v1495_v30  ;;  %v352_v47 = vsub.s32 32, %v351_v21  ;;  %v356_v14 = vsub.s32 4294967266, %v351_v21  ;;  %v1162_v26 = vpop.eup %1161 }
 0x131   :  { %1041 = vst [vmem:[#allocation2] sm:$0xff] %v1033_v56  ;;  %v353_v24 = vshll.u32 %v1559_v57, %v351_v21  ;;  %v731_v36 = vsel %vm725_vm15, %v728_v37, %v730_v63  ;;  %v1614_v60 = vmul.u32.u64.low %v1552_v45, %v735_v62  ;;  %v1615_v27 = vmul.u32.u64.high %v1552_v45, %v735_v62, %v1614_v60  ;;  %v1164_v25 = vpop.eup %1163 }
 0x132   :  { %v688_v20 = vxor.u32 2147483648, %v1162_v26  ;;  %v354_v35 = vshrl.u32 %v336_v22, %v352_v47  ;;  %v357_v31 = vadd.s32 127, %v356_v14  ;;  %v1620_v30 = vadd.f32 %v1329_v43, %v1302_v19 }
 0x133   :  { %v685_v1 = vxor.u32 2147483648, %v1164_v25  ;;  %vm687_vm7 = vcmp.eq.s32.totalorder %v1548_v33, 2  ;;  %v366_v57 = vsub.s32 4, %v1541_v48  ;;  %v1002_v12 = vmul.f32 %v1545_v16, %v1545_v16 }
 0x134   :  { %v689_v55 = vsel %vm687_vm7, %v688_v20, %v1164_v25  ;;  %v355_v53 = vor.u32 %v354_v35, %v353_v24  ;;  %v358_v41 = vshll.u32 %v357_v31, 23  ;;  %vm749_vm8 = vc.u32 %v1604_v13, %v1614_v60 }
 0x135   :  { %v686_v46 = vsel %vm684_vm5, %v1162_v26, %v685_v1  ;;  %v747_v43 = vmul.u32 %v1552_v45, %v731_v36  ;;  %v750_v5 = vadd.s32 1, %v1615_v27  ;;  %v1634_v2 = vadd.f32 %v1331_v44, %v1302_v19 }
 0x136   :  { %v690_v16 = vsel %vm683_vm2, %v686_v46, %v689_v55  ;;  %v359_v59 = vor.u32 4788187, %v358_v41  ;;  %v383_v50 = vand.u32 2147483647, %v1620_v30  ;;  %v386_v52 = vand.u32 2139095040, %v1620_v30 }
 0x137   :  { %v691_v34 = vsel %vm681_vm3, nan, %v690_v16  ;;  %v362_v28 = vcvt.s32.f32 %v355_v53  ;;  %v751_v45 = vsel %vm749_vm8, %v750_v5, %v1615_v27  ;;  %v1010_v37 = vsub.f32 0.0, %v1002_v12 }
 0x138   :  { %v1037_v63 = vmul.f32 %v1160_v39, %v691_v34  ;;  %v360_v11 = vand.u32 2147483647, %v359_v59  ;;  %v752_v9 = vadd.s32 %v751_v45, %v747_v43  ;;  %v387_v44 = vshrl.u32 %v386_v52, 23 }
 0x139   :  { %v367_v33 = vsel %vm282_vm6, %v366_v57, %v1541_v48  ;;  %v163_v62 = vadd.f32 %v1322_v38, %v1327_v42  ;;  %v798_v17 = vand.u32 2139095040, %v1634_v2  ;;  %v390_v3 = vand.u32 8388607, %v383_v50 }
 0x13a   :  { %1045 = vst [vmem:[#allocation2 + $0x20] sm:$0xff] %v1037_v63  ;;  %v363_v23 = vmul.f32 %v362_v28, %v360_v11  ;;  %v753_v56 = vadd.s32 536870912, %v752_v9  ;;  %v1081_v21 = vadd.s32 4294967169, %v387_v44  ;;  %v1019_v39 = vmul.f32 1.442695, %v1010_v37 }
 0x13b   :  { %v795_v22 = vand.u32 2147483647, %v1634_v2  ;;  %v799_v47 = vshrl.u32 %v798_v17, 23  ;;  %vm1654_vm9 = vcmp.le.f32.partialorder %v280_v61, 0.7853982  ;;  %v1662_v36 = vmul.f32 %v163_v62, %v163_v62 }
 0x13c   :  { %v364_v38 = vxor.u32 2147483648, %v363_v23  ;;  %v1658_v14 = vshrl.u32 %v753_v56, 30  ;;  %v393_v26 = vadd.s32 1, %v1081_v21  ;;  %v369_v24 = vsel %vm1654_vm9, 0, %v367_v33 }
 0x13d   :  { %v1097_v27 = vadd.s32 4294967169, %v799_v47  ;;  %v391_v35 = vor.u32 8388608, %v390_v3  ;;  %1165 = vpow2.f32 %v1019_v39  ;;  %v1672_v1 = vand.u32 8388607, %v795_v22 }
 0x13e   :  { %v365_v25 = vsel %vm282_vm6, %v364_v38, %v363_v23  ;;  %v755_v20 = vshll.u32 %v1658_v14, 30  ;;  %vm394_vm10 = vcmp.gt.s32.totalorder %v393_v26, 0  ;;  %v1674_v57 = vand.u32 3, %v369_v24 }
 0x13f   :  { %v368_v61 = vsel %vm1654_vm9, %v1325_v40, %v365_v25  ;;  %v395_v31 = vsel %vm394_vm10, %v393_v26, 0  ;;  %v1680_v41 = vadd.s32 1, %v1097_v27  ;;  %v748_v46 = vadd.s32 %v1614_v60, %v1604_v13 }
 0x140   :  { %1167 = vcosq.f32 %v368_v61  ;;  %v1676_v12 = vsub.s32 %v752_v9, %v755_v20  ;;  %v1678_v55 = vshrl.u32 %v395_v31, 5  ;;  %v397_v53 = vand.u32 31, %v395_v31 }
 0x141   :  { %1169 = vsinq.f32 %v368_v61  ;;  %v1014_v5 = vsub.f32 0.0, %v1662_v36  ;;  %v1686_v16 = vshll.u32 %v391_v35, 8  ;;  %v778_v59 = vsub.s32 4, %v1658_v14 }
 0x142   :  { %v758_v43 = vsub.s32 0, %v1676_v12  ;;  %v398_v52 = vsub.s32 32, %v397_v53  ;;  %vm415_vm11 = vcmp.lt.s32.totalorder %v1678_v55, 1  ;;  %v803_v34 = vor.u32 8388608, %v1672_v1 }
 0x143   :  { %vm378_vm12 = vcmp.eq.s32.totalorder %v1674_v57, 2  ;;  %v400_v45 = vshll.u32 %v1226_v0, %v397_v53  ;;  %v403_v13 = vshll.u32 %v1227_v4, %v397_v53  ;;  %v406_v60 = vshll.u32 %v1228_v6, %v397_v53 }
 0x144   :  { %v1094_v28 = vmin.u32 %v758_v43, %v1676_v12  ;;  %vm375_vm13 = vcmp.eq.s32.totalorder %v1674_v57, 0  ;;  %v399_v37 = vshrl.u32 %v1226_v0, %v398_v52  ;;  %v401_v63 = vshrl.u32 %v1227_v4, %v398_v52 }
 0x145   :  { %v404_v11 = vshrl.u32 %v1228_v6, %v398_v52  ;;  %v407_v9 = vshrl.u32 %v1229_v8, %v398_v52  ;;  %vm806_vm14 = vcmp.gt.s32.totalorder %v1680_v41, 0  ;;  %vm374_vm15 = vcmp.lt.s32.totalorder %v1674_v57, 2 }
 0x146   :  { %v760_v44 = vclz %v1094_v28  ;;  %v409_v33 = vshll.u32 %v1229_v8, %v397_v53  ;;  %v410_v62 = vshrl.u32 %v1230_v10, %v398_v52  ;;  %v412_v17 = vshll.u32 %v1230_v10, %v397_v53 }
 0x147   :  { %vm372_vm0 = vweird.f32 %v1325_v40  ;;  %v402_v23 = vor.u32 %v401_v63, %v400_v45  ;;  %v405_v56 = vor.u32 %v404_v11, %v403_v13  ;;  %v408_v21 = vor.u32 %v407_v9, %v406_v60  ;;  %v1166_v48 = vpop.eup %1165 }
 0x148   :  { %v413_v3 = vshrl.u32 %v1231_v18, %v398_v52  ;;  %v1095_v39 = vadd.s32 4294967294, %v760_v44  ;;  %v411_v47 = vor.u32 %v410_v62, %v409_v33  ;;  %vm416_vm1 = vcmp.lt.s32.totalorder %v1678_v55, 2 }
 0x149   :  { %vm418_vm2 = vcmp.lt.s32.totalorder %v1678_v55, 4  ;;  %vm417_vm3 = vcmp.lt.s32.totalorder %v1678_v55, 3  ;;  %v419_v26 = vsel %vm415_vm11, %v399_v37, %v402_v23  ;;  %v423_v20 = vsel %vm415_vm11, %v402_v23, %v405_v56 }
 0x14a   :  { %v414_v38 = vor.u32 %v413_v3, %v412_v17  ;;  %v420_v24 = vsel %vm418_vm2, %v408_v21, 2102212464  ;;  %v1168_v27 = vpop.eup %1167  ;;  %vm1096_vm4 = vcmp.lt.s32.totalorder %v1095_v39, 0  ;;  %v424_v35 = vsel %vm418_vm2, %v411_v47, 920167782 }
 0x14b   :  { %v421_v25 = vsel %vm417_vm3, %v405_v56, %v420_v24  ;;  %v1170_v61 = vpop.eup %1169  ;;  %v379_v31 = vxor.u32 2147483648, %v1168_v27  ;;  %v763_v53 = vsel %vm1096_vm4, 0, %v1095_v39  ;;  %v425_v43 = vsel %vm417_vm3, %v408_v21, %v424_v35 }
 0x14c   :  { %v427_v52 = vsel %vm415_vm11, %v405_v56, %v408_v21  ;;  %v376_v28 = vxor.u32 2147483648, %v1170_v61  ;;  %v764_v45 = vsub.s32 32, %v763_v53  ;;  %v768_v13 = vsub.s32 4294967266, %v763_v53 }
 0x14d   :  { %v422_v60 = vsel %vm416_vm1, %v419_v26, %v421_v25  ;;  %v380_v37 = vsel %vm378_vm12, %v379_v31, %v1170_v61  ;;  %v765_v63 = vshll.u32 %v1676_v12, %v763_v53  ;;  %v426_v11 = vsel %vm416_vm1, %v423_v20, %v425_v43 }
 0x14e   :  { %v428_v9 = vsel %vm418_vm2, %v414_v38, 1326507024  ;;  %v377_v44 = vsel %vm375_vm13, %v1168_v27, %v376_v28  ;;  %v766_v33 = vshrl.u32 %v748_v46, %v764_v45  ;;  %v769_v62 = vadd.s32 127, %v768_v13 }
 0x14f   :  { %v429_v17 = vsel %vm417_vm3, %v411_v47, %v428_v9  ;;  %v381_v23 = vsel %vm374_vm15, %v377_v44, %v380_v37  ;;  %v1743_v56 = vmul.u32.u64.low %v1686_v16, %v426_v11  ;;  %v1744_v21 = vmul.u32.u64.high %v1686_v16, %v426_v11, %v1743_v56 }
 0x150   :  { %v430_v12 = vsel %vm416_vm1, %v427_v52, %v429_v17  ;;  %v382_v3 = vsel %vm372_vm0, nan, %v381_v23  ;;  %v767_v39 = vor.u32 %v766_v33, %v765_v63  ;;  %v770_v46 = vshll.u32 %v769_v62, 23 }
 0x151   :  { %v807_v47 = vsel %vm806_vm14, %v1680_v41, 0  ;;  %vm1754_vm5 = vcmp.le.f32.partialorder %v692_v32, 0.7853982  ;;  %v1034_v55 = vmul.f32 %v1166_v48, %v382_v3  ;;  %vm694_vm6 = vcmp.lt.s32.totalorder %v1437_v29, 0 }
 0x152   :  { %v1759_v38 = vmul.u32.u64.low %v1686_v16, %v430_v12  ;;  %v1760_v26 = vmul.u32.u64.high %v1686_v16, %v430_v12, %v1759_v38  ;;  %v771_v40 = vor.u32 4788187, %v770_v46  ;;  %v1027_v24 = vmul.f32 1.442695, %v1014_v5 }
 0x153   :  { %v809_v27 = vand.u32 31, %v807_v47  ;;  %v779_v32 = vsel %vm694_vm6, %v778_v59, %v1658_v14  ;;  %1042 = vst [vmem:[#allocation2 + $0x8] sm:$0xff] %v1034_v55  ;;  %v438_v41 = vmul.u32 %v1686_v16, %v422_v60  ;;  %v441_v48 = vadd.s32 1, %v1744_v21 }
 0x154   :  { %v1774_v25 = vshll.u32 %v803_v34, 8  ;;  %v772_v20 = vand.u32 2147483647, %v771_v40  ;;  %v774_v35 = vcvt.s32.f32 %v767_v39  ;;  %v808_v36 = vshrl.u32 %v807_v47, 5 }
 0x155   :  { %v810_v5 = vsub.s32 32, %v809_v27  ;;  %vm440_vm7 = vc.u32 %v1760_v26, %v1743_v56  ;;  %v812_v61 = vshll.u32 %v1226_v0, %v809_v27  ;;  %v815_v14 = vshll.u32 %v1227_v4, %v809_v27 }
 0x156   :  { %v818_v59 = vshll.u32 %v1228_v6, %v809_v27  ;;  %v775_v16 = vmul.f32 %v774_v35, %v772_v20  ;;  %v442_v31 = vsel %vm440_vm7, %v441_v48, %v1744_v21  ;;  %v821_v34 = vshll.u32 %v1229_v8, %v809_v27 }
 0x157   :  { %v813_v1 = vshrl.u32 %v1227_v4, %v810_v5  ;;  %v443_v53 = vadd.s32 %v442_v31, %v438_v41  ;;  %v816_v43 = vshrl.u32 %v1228_v6, %v810_v5  ;;  %v819_v52 = vshrl.u32 %v1229_v8, %v810_v5 }
 0x158   :  { %v822_v28 = vshrl.u32 %v1230_v10, %v810_v5  ;;  %v776_v45 = vxor.u32 2147483648, %v775_v16  ;;  %v824_v60 = vshll.u32 %v1230_v10, %v809_v27  ;;  %v825_v37 = vshrl.u32 %v1231_v18, %v810_v5 }
 0x159   :  { %v814_v13 = vor.u32 %v813_v1, %v812_v61  ;;  %v444_v63 = vadd.s32 536870912, %v443_v53  ;;  %v817_v11 = vor.u32 %v816_v43, %v815_v14  ;;  %v820_v9 = vor.u32 %v819_v52, %v818_v59 }
 0x15a   :  { %v823_v44 = vor.u32 %v822_v28, %v821_v34  ;;  %v777_v33 = vsel %vm694_vm6, %v776_v45, %v775_v16  ;;  %v781_v62 = vsel %vm1754_vm5, 0, %v779_v32  ;;  %v826_v17 = vor.u32 %v825_v37, %v824_v60 }
 0x15b   :  { %vm827_vm8 = vcmp.lt.s32.totalorder %v808_v36, 1  ;;  %v780_v23 = vsel %vm1754_vm5, %v1437_v29, %v777_v33  ;;  %v445_v12 = vshrl.u32 %v444_v63, 30  ;;  %v811_v21 = vshrl.u32 %v1226_v0, %v810_v5 }
 0x15c   :  { %vm830_vm9 = vcmp.lt.s32.totalorder %v808_v36, 4  ;;  %1171 = vcosq.f32 %v780_v23  ;;  %v835_v39 = vsel %vm827_vm8, %v814_v13, %v817_v11  ;;  %vm829_vm10 = vcmp.lt.s32.totalorder %v808_v36, 3 }
 0x15d   :  { %v832_v3 = vsel %vm830_vm9, %v820_v9, 2102212464  ;;  %v836_v46 = vsel %vm830_vm9, %v823_v44, 920167782  ;;  %1173 = vsinq.f32 %v780_v23  ;;  %v446_v47 = vshll.u32 %v445_v12, 30 }
 0x15e   :  { %v839_v55 = vsel %vm827_vm8, %v817_v11, %v820_v9  ;;  %vm828_vm11 = vcmp.lt.s32.totalorder %v808_v36, 2  ;;  %v831_v38 = vsel %vm827_vm8, %v811_v21, %v814_v13  ;;  %v837_v40 = vsel %vm829_vm10, %v820_v9, %v836_v46 }
 0x15f   :  { %v840_v27 = vsel %vm830_vm9, %v826_v17, 1326507024  ;;  %v1797_v32 = vsub.s32 %v443_v53, %v446_v47  ;;  %v833_v57 = vsel %vm829_vm10, %v817_v11, %v832_v3  ;;  %v838_v41 = vsel %vm828_vm11, %v835_v39, %v837_v40 }
 0x160   :  { %v841_v48 = vsel %vm829_vm10, %v823_v44, %v840_v27  ;;  %v785_v20 = vand.u32 3, %v781_v62  ;;  %v1800_v5 = vmul.u32.u64.low %v1774_v25, %v838_v41  ;;  %v1801_v61 = vmul.u32.u64.high %v1774_v25, %v838_v41, %v1800_v5 }
 0x161   :  { %v842_v35 = vsel %vm828_vm11, %v839_v55, %v841_v48  ;;  %v449_v14 = vsub.s32 0, %v1797_v32  ;;  %v1811_v16 = vadd.f32 %v1341_v54, %v1302_v19  ;;  %1175 = vpow2.f32 %v1027_v24 }
 0x162   :  { %v1806_v59 = vmul.u32.u64.low %v1774_v25, %v842_v35  ;;  %v1807_v36 = vmul.u32.u64.high %v1774_v25, %v842_v35, %v1806_v59  ;;  %v834_v31 = vsel %vm828_vm11, %v831_v38, %v833_v57  ;;  %v145_v1 = vadd.f32 %v1333_v49, %v1327_v42 }
 0x163   :  { %vm784_vm12 = vweird.f32 %v1437_v29  ;;  %v1082_v34 = vmin.u32 %v449_v14, %v1797_v32  ;;  %vm786_vm13 = vcmp.lt.s32.totalorder %v785_v20, 2  ;;  %vm385_vm14 = vcmp.lt.s32.totalorder %v1620_v30, 0 }
 0x164   :  { %v853_v53 = vadd.s32 1, %v1801_v61  ;;  %v169_v43 = vadd.f32 %v1336_v51, %v1327_v42  ;;  %vm1823_vm15 = vcmp.le.f32.partialorder %v383_v50, 0.7853982  ;;  %v850_v49 = vmul.u32 %v1774_v25, %v834_v31 }
 0x165   :  { %v451_v24 = vclz %v1082_v34  ;;  %vm852_vm0 = vc.u32 %v1807_v36, %v1800_v5  ;;  %v489_v52 = vand.u32 2139095040, %v1811_v16  ;;  %v469_v45 = vsub.s32 4, %v445_v12 }
 0x166   :  { %v1172_v28 = vpop.eup %1171  ;;  %v854_v13 = vsel %vm852_vm0, %v853_v53, %v1801_v61  ;;  %v1003_v60 = vmul.f32 %v145_v1, %v145_v1  ;;  %v486_v51 = vand.u32 2147483647, %v1811_v16  ;;  %vm787_vm1 = vcmp.eq.s32.totalorder %v785_v20, 0 }
 0x167   :  { %v1174_v37 = vpop.eup %1173  ;;  %v791_v50 = vxor.u32 2147483648, %v1172_v28  ;;  %v1083_v63 = vadd.s32 4294967294, %v451_v24  ;;  %v855_v11 = vadd.s32 %v854_v13, %v850_v49  ;;  %v490_v9 = vshrl.u32 %v489_v52, 23 }
 0x168   :  { %v788_v44 = vxor.u32 2147483648, %v1174_v37  ;;  %vm790_vm2 = vcmp.eq.s32.totalorder %v785_v20, 2  ;;  %v439_v25 = vadd.s32 %v1743_v56, %v1760_v26  ;;  %v470_v3 = vsel %vm385_vm14, %v469_v45, %v445_v12 }
 0x169   :  { %v792_v33 = vsel %vm790_vm2, %v791_v50, %v1174_v37  ;;  %vm1084_vm3 = vcmp.lt.s32.totalorder %v1083_v63, 0  ;;  %v856_v62 = vadd.s32 536870912, %v855_v11  ;;  %v1085_v17 = vadd.s32 4294967169, %v490_v9 }
 0x16a   :  { %v789_v23 = vsel %vm787_vm1, %v1172_v28, %v788_v44  ;;  %v454_v21 = vsel %vm1084_vm3, 0, %v1083_v63  ;;  %v1011_v39 = vsub.f32 0.0, %v1003_v60  ;;  %v493_v38 = vand.u32 8388607, %v486_v51 }
 0x16b   :  { %v793_v46 = vsel %vm786_vm13, %v789_v23, %v792_v33  ;;  %v455_v47 = vsub.s32 32, %v454_v21  ;;  %v459_v55 = vsub.s32 4294967266, %v454_v21  ;;  %v1176_v40 = vpop.eup %1175  ;;  %v1842_v26 = vshrl.u32 %v856_v62, 30 }
 0x16c   :  { %v794_v56 = vsel %vm784_vm12, nan, %v793_v46  ;;  %v496_v27 = vadd.s32 1, %v1085_v17  ;;  %v1846_v57 = vadd.f32 %v1363_v15, %v1302_v19  ;;  %v456_v41 = vshll.u32 %v1797_v32, %v454_v21 }
 0x16d   :  { %v1038_v12 = vmul.f32 %v1176_v40, %v794_v56  ;;  %v457_v48 = vshrl.u32 %v439_v25, %v455_v47  ;;  %v460_v20 = vadd.s32 127, %v459_v55  ;;  %v472_v35 = vsel %vm1823_vm15, 0, %v470_v3 }
 0x16e   :  { %v858_v61 = vshll.u32 %v1842_v26, 30  ;;  %v1021_v14 = vmul.f32 1.442695, %v1011_v39  ;;  %vm497_vm4 = vcmp.gt.s32.totalorder %v496_v27, 0  ;;  %v494_v31 = vor.u32 8388608, %v493_v38 }
 0x16f   :  { %1046 = vst [vmem:[#allocation2 + $0x28] sm:$0xff] %v1038_v12  ;;  %v458_v29 = vor.u32 %v457_v48, %v456_v41  ;;  %v461_v59 = vshll.u32 %v460_v20, 23  ;;  %v498_v1 = vsel %vm497_vm4, %v496_v27, 0  ;;  %v901_v15 = vand.u32 2139095040, %v1846_v57 }
 0x170   :  { %v1852_v34 = vsub.s32 %v855_v11, %v858_v61  ;;  %v500_v19 = vand.u32 31, %v498_v1  ;;  %v1855_v53 = vand.u32 3, %v472_v35  ;;  %v1857_v24 = vmul.f32 %v169_v43, %v169_v43 }
 0x171   :  { %v462_v32 = vor.u32 4788187, %v461_v59  ;;  %v851_v49 = vadd.s32 %v1800_v5, %v1807_v36  ;;  %1177 = vpow2.f32 %v1021_v14  ;;  %v465_v13 = vcvt.s32.f32 %v458_v29 }
 0x172   :  { %v861_v52 = vsub.s32 0, %v1852_v34  ;;  %v501_v28 = vsub.s32 32, %v500_v19  ;;  %v881_v60 = vsub.s32 4, %v1842_v26  ;;  %v1863_v37 = vshll.u32 %v494_v31, 8 }
 0x173   :  { %v463_v45 = vand.u32 2147483647, %v462_v32  ;;  %v1866_v63 = vshrl.u32 %v498_v1, 5  ;;  %v503_v43 = vshll.u32 %v1226_v0, %v500_v19  ;;  %v902_v11 = vshrl.u32 %v901_v15, 23 }
 0x174   :  { %v1098_v50 = vmin.u32 %v861_v52, %v1852_v34  ;;  %v504_v5 = vshrl.u32 %v1227_v4, %v501_v28  ;;  %v506_v36 = vshll.u32 %v1227_v4, %v500_v19  ;;  %v507_v44 = vshrl.u32 %v1228_v6, %v501_v28 }
 0x175   :  { %v466_v9 = vmul.f32 %v465_v13, %v463_v45  ;;  %v509_v33 = vshll.u32 %v1228_v6, %v500_v19  ;;  %v510_v62 = vshrl.u32 %v1229_v8, %v501_v28  ;;  %v513_v17 = vshrl.u32 %v1230_v10, %v501_v28 }
 0x176   :  { %v863_v25 = vclz %v1098_v50  ;;  %v512_v21 = vshll.u32 %v1229_v8, %v500_v19  ;;  %v515_v3 = vshll.u32 %v1230_v10, %v500_v19  ;;  %v516_v39 = vshrl.u32 %v1231_v18, %v501_v28 }
 0x177   :  { %v467_v23 = vxor.u32 2147483648, %v466_v9  ;;  %v502_v47 = vshrl.u32 %v1226_v0, %v501_v28  ;;  %v505_v55 = vor.u32 %v504_v5, %v503_v43  ;;  %v508_v38 = vor.u32 %v507_v44, %v506_v36 }
 0x178   :  { %v1099_v46 = vadd.s32 4294967294, %v863_v25  ;;  %vm797_vm5 = vcmp.lt.s32.totalorder %v1634_v2, 0  ;;  %v511_v56 = vor.u32 %v510_v62, %v509_v33  ;;  %v514_v27 = vor.u32 %v513_v17, %v512_v21 }
 0x179   :  { %v468_v40 = vsel %vm385_vm14, %v467_v23, %v466_v9  ;;  %v517_v12 = vor.u32 %v516_v39, %v515_v3  ;;  %vm518_vm7 = vcmp.lt.s32.totalorder %v1866_v63, 1  ;;  %vm519_vm8 = vcmp.lt.s32.totalorder %v1866_v63, 2 }
 0x17a   :  { %v471_v41 = vsel %vm1823_vm15, %v1620_v30, %v468_v40  ;;  %vm1100_vm6 = vcmp.lt.s32.totalorder %v1099_v46, 0  ;;  %vm520_vm9 = vcmp.lt.s32.totalorder %v1866_v63, 3  ;;  %vm521_vm10 = vcmp.lt.s32.totalorder %v1866_v63, 4 }
 0x17b   :  { %1179 = vcosq.f32 %v471_v41  ;;  %v866_v48 = vsel %vm1100_vm6, 0, %v1099_v46  ;;  %v1889_v20 = vpop.eup %1177  ;;  %v526_v54 = vsel %vm518_vm7, %v505_v55, %v508_v38  ;;  %v523_v14 = vsel %vm521_vm10, %v511_v56, 2102212464 }
 0x17c   :  { %1181 = vsinq.f32 %v471_v41  ;;  %v867_v35 = vsub.s32 32, %v866_v48  ;;  %v871_v61 = vsub.s32 4294967266, %v866_v48  ;;  %v527_v29 = vsel %vm521_vm10, %v514_v27, 920167782 }
 0x17d   :  { %v530_v59 = vsel %vm518_vm7, %v508_v38, %v511_v56  ;;  %v531_v31 = vsel %vm521_vm10, %v517_v12, 1326507024  ;;  %v868_v1 = vshll.u32 %v1852_v34, %v866_v48  ;;  %v528_v32 = vsel %vm520_vm9, %v511_v56, %v527_v29 }
 0x17e   :  { %v869_v19 = vshrl.u32 %v851_v49, %v867_v35  ;;  %v872_v15 = vadd.s32 127, %v871_v61  ;;  %v522_v52 = vsel %vm518_vm7, %v502_v47, %v505_v55  ;;  %v529_v28 = vsel %vm519_vm8, %v526_v54, %v528_v32 }
 0x17f   :  { %v532_v45 = vsel %vm520_vm9, %v514_v27, %v531_v31  ;;  %v1101_v13 = vadd.s32 4294967169, %v902_v11  ;;  %v524_v34 = vsel %vm520_vm9, %v508_v38, %v523_v14  ;;  %vm475_vm11 = vweird.f32 %v1620_v30 }
 0x180   :  { %v870_v50 = vor.u32 %v869_v19, %v868_v1  ;;  %v873_v43 = vshll.u32 %v872_v15, 23  ;;  %v533_v49 = vsel %vm519_vm8, %v530_v59, %v532_v45  ;;  %v882_v25 = vsel %vm797_vm5, %v881_v60, %v1842_v26 }
 0x181   :  { %v1909_v9 = vmul.u32.u64.low %v1863_v37, %v533_v49  ;;  %v1910_v5 = vmul.u32.u64.high %v1863_v37, %v533_v49, %v1909_v9  ;;  %v1913_v36 = vmul.u32.u64.low %v1863_v37, %v529_v28  ;;  %v1914_v44 = vmul.u32.u64.high %v1863_v37, %v529_v28, %v1913_v36 }
 0x182   :  { %v874_v11 = vor.u32 4788187, %v873_v43  ;;  %v908_v33 = vadd.s32 1, %v1101_v13  ;;  %vm477_vm12 = vcmp.lt.s32.totalorder %v1855_v53, 2  ;;  %vm1924_vm13 = vcmp.le.f32.partialorder %v795_v22, 0.7853982 }
 0x183   :  { %v1015_v17 = vsub.f32 0.0, %v1857_v24  ;;  %v525_v23 = vsel %vm519_vm8, %v522_v52, %v524_v34  ;;  %v877_v3 = vcvt.s32.f32 %v870_v50  ;;  %v898_v39 = vand.u32 2147483647, %v1846_v57 }
 0x184   :  { %v875_v21 = vand.u32 2147483647, %v874_v11  ;;  %vm909_vm14 = vcmp.gt.s32.totalorder %v908_v33, 0  ;;  %v884_v60 = vsel %vm1924_vm13, 0, %v882_v25  ;;  %vm543_vm15 = vc.u32 %v1910_v5, %v1913_v36 }
 0x185   :  { %v1180_v26 = vpop.eup %1179  ;;  %v544_v22 = vadd.s32 1, %v1914_v44  ;;  %v910_v46 = vsel %vm909_vm14, %v908_v33, 0  ;;  %v541_v63 = vmul.u32 %v1863_v37, %v525_v23  ;;  %vm478_vm0 = vcmp.eq.s32.totalorder %v1855_v53, 0 }
 0x186   :  { %v1182_v47 = vpop.eup %1181  ;;  %v482_v24 = vxor.u32 2147483648, %v1180_v26  ;;  %v878_v55 = vmul.f32 %v877_v3, %v875_v21  ;;  %v912_v38 = vand.u32 31, %v910_v46  ;;  %vm481_vm1 = vcmp.eq.s32.totalorder %v1855_v53, 2 }
 0x187   :  { %v479_v40 = vxor.u32 2147483648, %v1182_v47  ;;  %v545_v56 = vsel %vm543_vm15, %v544_v22, %v1914_v44  ;;  %v1941_v61 = vand.u32 3, %v884_v60  ;;  %v1029_v54 = vmul.f32 1.442695, %v1015_v17 }
 0x188   :  { %v483_v27 = vsel %vm481_vm1, %v482_v24, %v1182_v47  ;;  %v879_v12 = vxor.u32 2147483648, %v878_v55  ;;  %v546_v41 = vadd.s32 %v545_v56, %v541_v63  ;;  %v913_v48 = vsub.s32 32, %v912_v38 }
 0x189   :  { %v480_v35 = vsel %vm478_vm0, %v1180_v26, %v479_v40  ;;  %v905_v14 = vand.u32 8388607, %v898_v39  ;;  %v915_v31 = vshll.u32 %v1226_v0, %v912_v38  ;;  %v911_v45 = vshrl.u32 %v910_v46, 5 }
 0x18a   :  { %v484_v37 = vsel %vm477_vm12, %v480_v35, %v483_v27  ;;  %v880_v29 = vsel %vm797_vm5, %v879_v12, %v878_v55  ;;  %v547_v59 = vadd.s32 536870912, %v546_v41  ;;  %v916_v15 = vshrl.u32 %v1227_v4, %v913_v48 }
 0x18b   :  { %v485_v1 = vsel %vm475_vm11, nan, %v484_v37  ;;  %v883_v19 = vsel %vm1924_vm13, %v1634_v2, %v880_v29  ;;  %v919_v32 = vshrl.u32 %v1228_v6, %v913_v48  ;;  %v922_v28 = vshrl.u32 %v1229_v8, %v913_v48 }
 0x18c   :  { %1183 = vcosq.f32 %v883_v19  ;;  %v1035_v53 = vmul.f32 %v1889_v20, %v485_v1  ;;  %v1958_v52 = vshrl.u32 %v547_v59, 30  ;;  %v918_v30 = vshll.u32 %v1227_v4, %v912_v38 }
 0x18d   :  { %1185 = vsinq.f32 %v883_v19  ;;  %v921_v13 = vshll.u32 %v1228_v6, %v912_v38  ;;  %v917_v43 = vor.u32 %v916_v15, %v915_v31  ;;  %v924_v34 = vshll.u32 %v1229_v8, %v912_v38 }
 0x18e   :  { %1043 = vst [vmem:[#allocation2 + $0x10] sm:$0xff] %v1035_v53  ;;  %v549_v50 = vshll.u32 %v1958_v52, 30  ;;  %v925_v49 = vshrl.u32 %v1230_v10, %v913_v48  ;;  %v920_v9 = vor.u32 %v919_v32, %v918_v30  ;;  %v927_v44 = vshll.u32 %v1230_v10, %v912_v38 }
 0x18f   :  { %v923_v20 = vor.u32 %v922_v28, %v921_v13  ;;  %v928_v11 = vshrl.u32 %v1231_v18, %v913_v48  ;;  %1187 = vpow2.f32 %v1029_v54  ;;  %v906_v4 = vor.u32 8388608, %v905_v14 }
 0x190   :  { %v550_v25 = vsub.s32 %v546_v41, %v549_v50  ;;  %v926_v33 = vor.u32 %v925_v49, %v924_v34  ;;  %vm893_vm2 = vcmp.eq.s32.totalorder %v1941_v61, 2  ;;  %vm930_vm3 = vcmp.lt.s32.totalorder %v911_v45, 1 }
 0x191   :  { %v929_v62 = vor.u32 %v928_v11, %v927_v44  ;;  %vm933_vm4 = vcmp.lt.s32.totalorder %v911_v45, 4  ;;  %v938_v8 = vsel %vm930_vm3, %v917_v43, %v920_v9  ;;  %v942_v23 = vsel %vm930_vm3, %v920_v9, %v923_v20 }
 0x192   :  { %v552_v6 = vsub.s32 0, %v550_v25  ;;  %v939_v17 = vsel %vm933_vm4, %v926_v33, 920167782  ;;  %v914_v10 = vshrl.u32 %v1226_v0, %v913_v48  ;;  %vm932_vm5 = vcmp.lt.s32.totalorder %v911_v45, 3 }
 0x193   :  { %v943_v21 = vsel %vm933_vm4, %v929_v62, 1326507024  ;;  %v935_v18 = vsel %vm933_vm4, %v923_v20, 2102212464  ;;  %vm931_vm6 = vcmp.lt.s32.totalorder %v911_v45, 2  ;;  %v940_v26 = vsel %vm932_vm5, %v923_v20, %v939_v17 }
 0x194   :  { %v1086_v3 = vmin.u32 %v552_v6, %v550_v25  ;;  %v944_v60 = vsel %vm932_vm5, %v926_v33, %v943_v21  ;;  %v946_v22 = vshll.u32 %v906_v4, 8  ;;  %v934_v24 = vsel %vm930_vm3, %v914_v10, %v917_v43 }
 0x195   :  { %v941_v55 = vsel %vm931_vm6, %v938_v8, %v940_v26  ;;  %v945_v63 = vsel %vm931_vm6, %v942_v23, %v944_v60  ;;  %v936_v56 = vsel %vm932_vm5, %v920_v9, %v935_v18  ;;  %vm890_vm7 = vcmp.eq.s32.totalorder %v1941_v61, 0 }
 0x196   :  { %v1184_v46 = vpop.eup %1183  ;;  %v554_v47 = vclz %v1086_v3  ;;  %v1975_v27 = vmul.u32.u64.low %v946_v22, %v945_v63  ;;  %v1976_v12 = vmul.u32.u64.high %v946_v22, %v945_v63, %v1975_v27  ;;  %vm887_vm8 = vweird.f32 %v1634_v2 }
 0x197   :  { %v1186_v38 = vpop.eup %1185  ;;  %v894_v40 = vxor.u32 2147483648, %v1184_v46  ;;  %v1978_v48 = vmul.u32.u64.low %v946_v22, %v941_v55  ;;  %v1979_v35 = vmul.u32.u64.high %v946_v22, %v941_v55, %v1978_v48  ;;  %vm889_vm9 = vcmp.lt.s32.totalorder %v1941_v61, 2 }
 0x198   :  { %v891_v0 = vxor.u32 2147483648, %v1186_v38  ;;  %v1087_v41 = vadd.s32 4294967294, %v554_v47  ;;  %v542_v59 = vadd.s32 %v1913_v36, %v1910_v5  ;;  %v937_v1 = vsel %vm931_vm6, %v934_v24, %v936_v56 }
 0x199   :  { %v895_v54 = vsel %vm893_vm2, %v894_v40, %v1186_v38  ;;  %v1188_v37 = vpop.eup %1187  ;;  %vm955_vm11 = vc.u32 %v1976_v12, %v1978_v48  ;;  %v956_v2 = vadd.s32 1, %v1979_v35  ;;  %v953_v13 = vmul.u32 %v946_v22, %v937_v1 }
 0x19a   :  { %v892_v14 = vsel %vm890_vm7, %v1184_v46, %v891_v0  ;;  %vm1088_vm10 = vcmp.lt.s32.totalorder %v1087_v41, 0  ;;  %v151_v49 = vadd.f32 %v1439_v58, %v1327_v42  ;;  %vm1999_vm12 = vcmp.le.f32.partialorder %v486_v51, 0.7853982 }
 0x19b   :  { %v896_v29 = vsel %vm889_vm9, %v892_v14, %v895_v54  ;;  %v557_v31 = vsel %vm1088_vm10, 0, %v1087_v41  ;;  %v957_v50 = vsel %vm955_vm11, %v956_v2, %v1979_v35  ;;  %vm488_vm13 = vcmp.lt.s32.totalorder %v1811_v16, 0 }
 0x19c   :  { %v897_v19 = vsel %vm887_vm8, nan, %v896_v29  ;;  %v558_v15 = vsub.s32 32, %v557_v31  ;;  %v562_v32 = vsub.s32 4294967266, %v557_v31  ;;  %v559_v28 = vshll.u32 %v550_v25, %v557_v31 }
 0x19d   :  { %v1039_v53 = vmul.f32 %v1188_v37, %v897_v19  ;;  %v958_v36 = vadd.s32 %v957_v50, %v953_v13  ;;  %v1004_v33 = vmul.f32 %v151_v49, %v151_v49  ;;  %v572_v58 = vsub.s32 4, %v1958_v52 }
 0x19e   :  { %v560_v61 = vshrl.u32 %v542_v59, %v558_v15  ;;  %v563_v30 = vadd.s32 127, %v562_v32  ;;  %v954_v47 = vadd.s32 %v1978_v48, %v1976_v12  ;;  %v175_v12 = vadd.f32 %v1477_v7, %v1327_v42 }
 0x19f   :  { %1047 = vst [vmem:[#allocation2 + $0x30] sm:$0xff] %v1039_v53  ;;  %v959_v34 = vadd.s32 536870912, %v958_v36  ;;  %v1012_v23 = vsub.f32 0.0, %v1004_v33  ;;  %v573_v10 = vsel %vm488_vm13, %v572_v58, %v1958_v52  ;;  %vm578_vm2 = vweird.f32 %v1811_v16 }
 0x1a0   :  { %v561_v43 = vor.u32 %v560_v61, %v559_v28  ;;  %v564_v5 = vshll.u32 %v563_v30, 23  ;;  %v575_v60 = vsel %vm1999_vm12, 0, %v573_v10  ;;  %v1008_v32 = vmul.f32 %v175_v12, %v175_v12 }
 0x1a1   :  { %v1994_v44 = vshrl.u32 %v959_v34, 30  ;;  %v1023_v18 = vmul.f32 1.442695, %v1012_v23  ;;  %v579_v46 = vand.u32 3, %v575_v60  ;;  %vm900_vm3 = vcmp.lt.s32.totalorder %v1846_v57, 0 }
 0x1a2   :  { %v565_v45 = vor.u32 4788187, %v564_v5  ;;  %v568_v20 = vcvt.s32.f32 %v561_v43  ;;  %vm899_vm4 = vcmp.le.f32.partialorder %v898_v39, 0.7853982  ;;  %v1016_v7 = vsub.f32 0.0, %v1008_v32 }
 0x1a3   :  { %v961_v25 = vshll.u32 %v1994_v44, 30  ;;  %vm584_vm15 = vcmp.eq.s32.totalorder %v579_v46, 2  ;;  %vm581_vm0 = vcmp.eq.s32.totalorder %v579_v46, 0  ;;  %vm580_vm1 = vcmp.lt.s32.totalorder %v579_v46, 2 }
 0x1a4   :  { %v566_v9 = vand.u32 2147483647, %v565_v45  ;;  %v984_v42 = vsub.s32 4, %v1994_v44  ;;  %v1031_v61 = vmul.f32 1.442695, %v1016_v7  ;;  %vm990_vm8 = vweird.f32 %v1846_v57 }
 0x1a5   :  { %v962_v62 = vsub.s32 %v958_v36, %v961_v25 }
 0x1a6   :  { %v569_v11 = vmul.f32 %v568_v20, %v566_v9  ;;  %v985_v28 = vsel %vm900_vm3, %v984_v42, %v1994_v44 }
 0x1a7   :  { %v964_v17 = vsub.s32 0, %v962_v62  ;;  %v987_v30 = vsel %vm899_vm4, 0, %v985_v28 }
 0x1a8   :  { %v570_v4 = vxor.u32 2147483648, %v569_v11  ;;  %v991_v13 = vand.u32 3, %v987_v30 }
 0x1a9   :  { %v1102_v3 = vmin.u32 %v964_v17, %v962_v62 }
 0x1aa   :  { %v571_v8 = vsel %vm488_vm13, %v570_v4, %v569_v11  ;;  %vm996_vm5 = vcmp.eq.s32.totalorder %v991_v13, 2  ;;  %vm993_vm6 = vcmp.eq.s32.totalorder %v991_v13, 0  ;;  %vm992_vm7 = vcmp.lt.s32.totalorder %v991_v13, 2 }
 0x1ab   :  { %v574_v21 = vsel %vm1999_vm12, %v1811_v16, %v571_v8  ;;  %v966_v51 = vclz %v1102_v3 }
 0x1ac   :  { %1189 = vcosq.f32 %v574_v21 }
 0x1ad   :  { %1191 = vsinq.f32 %v574_v21  ;;  %v1103_v26 = vadd.s32 4294967294, %v966_v51 }
 0x1ae   :  { %1193 = vpow2.f32 %v1023_v18 }
 0x1af   :  { %vm1104_vm14 = vcmp.lt.s32.totalorder %v1103_v26, 0 }
 0x1b0   :  { %v969_v22 = vsel %vm1104_vm14, 0, %v1103_v26 }
 0x1b1   :  { %v970_v24 = vsub.s32 32, %v969_v22  ;;  %v974_v55 = vsub.s32 4294967266, %v969_v22  ;;  %v971_v38 = vshll.u32 %v962_v62, %v969_v22 }
 0x1b3   :  { %v972_v40 = vshrl.u32 %v954_v47, %v970_v24  ;;  %v975_v56 = vadd.s32 127, %v974_v55 }
 0x1b5   :  { %v973_v41 = vor.u32 %v972_v40, %v971_v38  ;;  %v976_v35 = vshll.u32 %v975_v56, 23 }
 0x1b6   :  { %v1190_v63 = vpop.eup %1189 }
 0x1b7   :  { %v1192_v27 = vpop.eup %1191  ;;  %v585_v52 = vxor.u32 2147483648, %v1190_v63  ;;  %v977_v37 = vor.u32 4788187, %v976_v35  ;;  %v980_v1 = vcvt.s32.f32 %v973_v41 }
 0x1b8   :  { %v582_v0 = vxor.u32 2147483648, %v1192_v27  ;;  %v1194_v29 = vpop.eup %1193 }
 0x1b9   :  { %v586_v54 = vsel %vm584_vm15, %v585_v52, %v1192_v27  ;;  %v978_v31 = vand.u32 2147483647, %v977_v37 }
 0x1ba   :  { %v583_v14 = vsel %vm581_vm0, %v1190_v63, %v582_v0 }
 0x1bb   :  { %v587_v48 = vsel %vm580_vm1, %v583_v14, %v586_v54  ;;  %v981_v15 = vmul.f32 %v980_v1, %v978_v31 }
 0x1bc   :  { %v588_v59 = vsel %vm578_vm2, nan, %v587_v48 }
 0x1bd   :  { %v1036_v19 = vmul.f32 %v1194_v29, %v588_v59  ;;  %v982_v53 = vxor.u32 2147483648, %v981_v15 }
 0x1bf   :  { %1044 = vst [vmem:[#allocation2 + $0x18] sm:$0xff] %v1036_v19  ;;  %v983_v2 = vsel %vm900_vm3, %v982_v53, %v981_v15 }
 0x1c0   :  { %v986_v16 = vsel %vm899_vm4, %v1846_v57, %v983_v2 }
 0x1c1   :  { %1195 = vcosq.f32 %v986_v16 }
 0x1c2   :  { %1197 = vsinq.f32 %v986_v16 }
 0x1c3   :  { %1199 = vpow2.f32 %v1031_v61 }
 0x1cb   :  { %v1196_v50 = vpop.eup %1195 }
 0x1cc   :  { %v1198_v43 = vpop.eup %1197  ;;  %v997_v5 = vxor.u32 2147483648, %v1196_v50 }
 0x1cd   :  { %v994_v36 = vxor.u32 2147483648, %v1198_v43  ;;  %v1200_v49 = vpop.eup %1199 }
 0x1ce   :  { %v998_v39 = vsel %vm996_vm5, %v997_v5, %v1198_v43 }
 0x1cf   :  { %v995_v45 = vsel %vm993_vm6, %v1196_v50, %v994_v36 }
 0x1d0   :  { %v999_v34 = vsel %vm992_vm7, %v995_v45, %v998_v39 }
 0x1d1   :  { %v1000_v9 = vsel %vm990_vm8, nan, %v999_v34 }
 0x1d2   :  { %v1040_v20 = vmul.f32 %v1200_v49, %v1000_v9 }
 0x1d4   :  { %1048 = vst [vmem:[#allocation2 + $0x38] sm:$0xff] %v1040_v20 }
 0x1d5   :  { %1212 = shalt.err (!%p1209_p4)
}
 0x1d6   :  { %s1213_s13 = scalar_lea.hbm %s2037_s3, 1024 }
 0x1d7   :  { %p1214_p5 = scmp.ne.s32.totalorder %s2037_s3, %s1213_s13  ;;  %p1217_p6 = scmp.lt.u32.totalorder %s1213_s13, %s2037_s3 }
 0x1d9   :  { %p1219_p7 = pnand %p1217_p6, %p1214_p5 }
 0x1db   :  { %1222 = shalt.err (!%p1219_p7)
}
 0x1dc   :  { %s1233_s18 = smov 128   ;;  %s1234_s19 = smov 8  }
 0x1dd   :  { %1060 = dma.vmem_to_hbm [thread:$0]  %s1055_s2, 1024, %s2037_s3, [#allocation3], %s1233_s18, %s1233_s18, %s1234_s19  }
 0x1de   :  { %1223 = dma.done.wait [#allocation3], 1024  }
 0x1df   :  { %1224 = vsyncadd [#allocation3], 4294966272 }
 0x1e0   :  { %1064 = vsyncpa [#allocation3], 1 }

// kernel: tpu_custom_call.1
= control target key start
LH: loop header
LB: loop body
LE: loop exit
PB: predicated region body
PF: predicated region fallthrough
CT: control target
= control target key end

     0   :  { %v1225_v5 = vmov 0.0   ;;  %vm39_vm0 = vcmask 130048   ;;  %s2034_s0 = inlined_call_operand.vmem [shape: f32[64,16], index: 0, kind: input, shape index: {}]   ;;  %s2035_s1 = inlined_call_operand.vmem [shape: f32[16,256], index: 1, kind: input, shape index: {}]   ;;  %s2036_s2 = inlined_call_operand.vmem [shape: f32[1,256], index: 2, kind: input, shape index: {}]   ;;  %s2037_s3 = inlined_call_operand.hbm [shape: f32[64,128], index: 3, kind: output, shape index: {}]  }
   0x1   :  { %v24_v0 = vld [vmem:[%s2035_s1 + $0x8] sm:$0xff]  ;;  %v26_v1 = vld [vmem:[%s2035_s1 + $0x18] sm:$0xff]  ;;  %v23_v2 = vld [vmem:[%s2035_s1] sm:$0xff]  ;;  %128 = vmatprep.mubr.f32.mxu0 %v1225_v5  ;;  %152 = vmatprep.mubr.f32.mxu1 %v1225_v5 }
   0x2   :  { %v1105_v3 = vpack.c.bf16 %v26_v1, %v24_v0  ;;  %v25_v4 = vld [vmem:[%s2035_s1 + $0x10] sm:$0xff]  ;;  %v15_v7 = vld [vmem:[%s2034_s0] sm:$0xff] }
   0x3   :  { %v1107_v6 = vpack.c.bf16 %v25_v4, %v23_v2  ;;  %v19_v8 = vld [vmem:[%s2034_s0 + $0x20] sm:$0xff] }
   0x4   :  { %1106 = vmatprep.subr.bf16.mxu0 %v1105_v3  ;;  %1109 = vmatprep.subr.bf16.mxu1 %v1105_v3 }
   0x5   :  { %1108 = vmatpush1.bf16.msra.mxu0 %v1107_v6  ;;  %1110 = vmatpush1.bf16.msra.mxu1 %v1107_v6 }
   0x6   :  { %8 = vsyncpa [#allocation3], 0  ;;  %v16_v9 = vld [vmem:[%s2034_s0 + $0x8] sm:$0xff]  ;;  %v17_v11 = vld [vmem:[%s2034_s0 + $0x10] sm:$0xff]  ;;  %v29_v15 = vlaneseq  ;;  %v1226_v0 = vmov 683565275  }
   0x7   :  { %v20_v10 = vld [vmem:[%s2034_s0 + $0x28] sm:$0xff]  ;;  %v21_v12 = vld [vmem:[%s2034_s0 + $0x30] sm:$0xff]  ;;  %v18_v13 = vld [vmem:[%s2034_s0 + $0x18] sm:$0xff]  ;;  %v1227_v4 = vmov 2475754826  }
   0x8   :  { %1065 = vmatmul.mubr.msk.f32.vlgmr.msra.gmra.mrb[0].mxu0 %vm39_vm0, %v15_v7  ;;  %1069 = vmatmul.mubr.msk.f32.vlgmr.msra.gmra.mrb[0].mxu1 %vm39_vm0, %v19_v8  ;;  %v22_v14 = vld [vmem:[%s2034_s0 + $0x38] sm:$0xff]  ;;  %v30_v16 = vshrl.u32 %v29_v15, 7  ;;  %v27_v18 = vld [vmem:[%s2036_s2] sm:$0x3]  ;;  %v1228_v6 = vmov 2131351028  }
   0x9   :  { %134 = vmatprep.mubr.f32.mxu0 %v1225_v5  ;;  %158 = vmatprep.mubr.f32.mxu1 %v1225_v5  ;;  %v1229_v8 = vmov 2102212464   ;;  %s1232_s0 = smov [#allocation2]  }
   0xa   :  { %v31_v17 = vsub.s32 0, %v30_v16  ;;  %v35_v30 = vsub.s32 1, %v30_v16  ;;  %s1054_s2 = sshll.u32 %s1232_s0, 4  ;;  %s1055_s2 = int_to_ptr.vmem [resolvable:$true] %s1054_s2 }
   0xb   :  { %s1201_s10 = scalar_lea.vmem %s1055_s2, 1024  ;;  %p1206_p1 = scmp.lt.s32.totalorder %s1055_s2, %s1055_s2 }
   0xc   :  { %1066 = vmatmul.mubr.msk.f32.gmra.mrb[2].mxu0 %vm39_vm0, %v16_v9  ;;  %1070 = vmatmul.mubr.msk.f32.gmra.mrb[2].mxu1 %vm39_vm0, %v20_v10  ;;  %v1302_v19 = vrot.slane %v27_v18, %v31_v17  ;;  %v1327_v42 = vrot.slane %v27_v18, %v35_v30  ;;  %v1230_v10 = vmov 920167782   ;;  %v1231_v18 = vmov 1326507024   ;;  %p1202_p0 = scmp.ne.s32.totalorder %s1055_s2, %s1201_s10  ;;  %p1207_p2 = scmp.lt.s32.totalorder %s1201_s10, %s1201_s10 }
   0xd   :  { %140 = vmatprep.mubr.f32.mxu0 %v1225_v5  ;;  %164 = vmatprep.mubr.f32.mxu1 %v1225_v5 }
   0xe   :  { %p1208_p3 = por %p1207_p2, %p1206_p1 }
  0x10   :  { %1067 = vmatmul.mubr.msk.f32.gmra.mrb[4].mxu0 %vm39_vm0, %v17_v11  ;;  %1071 = vmatmul.mubr.msk.f32.gmra.mrb[4].mxu1 %vm39_vm0, %v21_v12  ;;  %p1209_p4 = pnand %p1208_p3, %p1202_p0 }
  0x11   :  { %146 = vmatprep.mubr.f32.mxu0 %v1225_v5  ;;  %170 = vmatprep.mubr.f32.mxu1 %v1225_v5 }
  0x14   :  { %1068 = vmatmul.mubr.msk.f32.gmra.mrb[6].mxu0 %vm39_vm0, %v18_v13  ;;  %1072 = vmatmul.mubr.msk.f32.gmra.mrb[6].mxu1 %vm39_vm0, %v22_v14 }
  0xdb   :  { %v130_v20 = vpop.f32.mrb[0].mxu0  ;;  %v154_v21 = vpop.f32.mrb[0].mxu1 }
  0xdc   :  { %v1305_v22 = vadd.f32 %v130_v20, %v1302_v19  ;;  %v1308_v23 = vadd.f32 %v154_v21, %v1302_v19  ;;  %v132_v24 = vpop.f32.mrb[1].mxu0  ;;  %v156_v25 = vpop.f32.mrb[1].mxu1 }
  0xdd   :  { %v1339_v53 = vadd.f32 %v132_v24, %v1327_v42  ;;  %v1344_v58 = vadd.f32 %v156_v25, %v1327_v42 }
  0xde   :  { %v177_v26 = vand.u32 2147483647, %v1305_v22  ;;  %v180_v27 = vand.u32 2139095040, %v1305_v22  ;;  %v589_v28 = vand.u32 2147483647, %v1308_v23  ;;  %v592_v29 = vand.u32 2139095040, %v1308_v23 }
  0xdf   :  { %v136_v31 = vpop.f32.mrb[2].mxu0  ;;  %v1314_v32 = vpop.f32.mrb[2].mxu1  ;;  %vm179_vm15 = vcmp.lt.s32.totalorder %v1305_v22, 0 }
  0xe0   :  { %v181_v33 = vshrl.u32 %v180_v27, 23  ;;  %v1316_v34 = vpop.f32.mrb[3].mxu0  ;;  %v184_v35 = vand.u32 8388607, %v177_v26  ;;  %v593_v36 = vshrl.u32 %v592_v29, 23  ;;  %v1322_v38 = vpop.f32.mrb[3].mxu1  ;;  %v1325_v40 = vadd.f32 %v136_v31, %v1302_v19 }
  0xe1   :  { %v596_v37 = vand.u32 8388607, %v589_v28 }
  0xe2   :  { %v1073_v39 = vadd.s32 4294967169, %v181_v33  ;;  %v1089_v41 = vadd.s32 4294967169, %v593_v36  ;;  %v185_v46 = vor.u32 8388608, %v184_v35  ;;  %v283_v50 = vand.u32 2139095040, %v1325_v40 }
  0xe3   :  { %v1329_v43 = vpop.f32.mrb[4].mxu0  ;;  %v1331_v44 = vpop.f32.mrb[4].mxu1  ;;  %v597_v47 = vor.u32 8388608, %v596_v37  ;;  %v280_v61 = vand.u32 2147483647, %v1325_v40 }
  0xe4   :  { %v187_v45 = vadd.s32 1, %v1073_v39  ;;  %v599_v48 = vadd.s32 1, %v1089_v41  ;;  %v1333_v49 = vpop.f32.mrb[5].mxu0  ;;  %v1336_v51 = vpop.f32.mrb[5].mxu1  ;;  %v1346_v59 = vshll.u32 %v185_v46, 8  ;;  %v1351_v62 = vshrl.u32 %v283_v50, 23 }
  0xe5   :  { %v1348_v60 = vshll.u32 %v597_v47, 8 }
  0xe6   :  { %vm188_vm1 = vcmp.gt.s32.totalorder %v187_v45, 0  ;;  %vm600_vm2 = vcmp.gt.s32.totalorder %v599_v48, 0 }
  0xe7   :  { %v189_v52 = vsel %vm188_vm1, %v187_v45, 0  ;;  %v1341_v54 = vpop.f32.mrb[6].mxu0  ;;  %v601_v57 = vsel %vm600_vm2, %v599_v48, 0  ;;  %v1363_v15 = vpop.f32.mrb[6].mxu1 }
  0xe8   :  { %v190_v55 = vshrl.u32 %v189_v52, 5  ;;  %v191_v56 = vand.u32 31, %v189_v52  ;;  %v1354_v2 = vshrl.u32 %v601_v57, 5  ;;  %v603_v3 = vand.u32 31, %v601_v57 }
  0xea   :  { %v192_v63 = vsub.s32 32, %v191_v56  ;;  %v194_v1 = vshll.u32 %v1226_v0, %v191_v56  ;;  %v197_v5 = vshll.u32 %v1227_v4, %v191_v56  ;;  %v200_v7 = vshll.u32 %v1228_v6, %v191_v56 }
  0xeb   :  { %v203_v9 = vshll.u32 %v1229_v8, %v191_v56  ;;  %v206_v11 = vshll.u32 %v1230_v10, %v191_v56  ;;  %vm209_vm3 = vcmp.lt.s32.totalorder %v190_v55, 1  ;;  %vm210_vm4 = vcmp.lt.s32.totalorder %v190_v55, 2 }
  0xec   :  { %v195_v12 = vshrl.u32 %v1227_v4, %v192_v63  ;;  %v198_v13 = vshrl.u32 %v1228_v6, %v192_v63  ;;  %v201_v14 = vshrl.u32 %v1229_v8, %v192_v63  ;;  %v193_v16 = vshrl.u32 %v1226_v0, %v192_v63 }
  0xed   :  { %v204_v17 = vshrl.u32 %v1230_v10, %v192_v63  ;;  %v207_v20 = vshrl.u32 %v1231_v18, %v192_v63  ;;  %v604_v27 = vsub.s32 32, %v603_v3  ;;  %vm211_vm5 = vcmp.lt.s32.totalorder %v190_v55, 3 }
  0xee   :  { %v196_v21 = vor.u32 %v195_v12, %v194_v1  ;;  %v199_v24 = vor.u32 %v198_v13, %v197_v5  ;;  %v202_v25 = vor.u32 %v201_v14, %v200_v7  ;;  %vm212_vm6 = vcmp.lt.s32.totalorder %v190_v55, 4 }
  0xef   :  { %v205_v29 = vor.u32 %v204_v17, %v203_v9  ;;  %v208_v30 = vor.u32 %v207_v20, %v206_v11  ;;  %v606_v45 = vshll.u32 %v1226_v0, %v603_v3  ;;  %v607_v48 = vshrl.u32 %v1227_v4, %v604_v27 }
  0xf0   :  { %v213_v31 = vsel %vm209_vm3, %v193_v16, %v196_v21  ;;  %v214_v33 = vsel %vm212_vm6, %v202_v25, 2102212464  ;;  %v217_v35 = vsel %vm209_vm3, %v196_v21, %v199_v24  ;;  %v221_v36 = vsel %vm209_vm3, %v199_v24, %v202_v25 }
  0xf1   :  { %v215_v37 = vsel %vm211_vm5, %v199_v24, %v214_v33  ;;  %v218_v39 = vsel %vm212_vm6, %v205_v29, 920167782  ;;  %v222_v41 = vsel %vm212_vm6, %v208_v30, 1326507024  ;;  %v609_v50 = vshll.u32 %v1227_v4, %v603_v3 }
  0xf2   :  { %v219_v46 = vsel %vm211_vm5, %v202_v25, %v218_v39  ;;  %v223_v47 = vsel %vm211_vm5, %v205_v29, %v222_v41  ;;  %v216_v52 = vsel %vm210_vm4, %v213_v31, %v215_v37  ;;  %v610_v63 = vshrl.u32 %v1228_v6, %v604_v27 }
  0xf3   :  { %v220_v56 = vsel %vm210_vm4, %v217_v35, %v219_v46  ;;  %v224_v57 = vsel %vm210_vm4, %v221_v36, %v223_v47  ;;  %v608_v11 = vor.u32 %v607_v48, %v606_v45  ;;  %v612_v13 = vshll.u32 %v1228_v6, %v603_v3 }
  0xf4   :  { %v1379_v1 = vmul.u32.u64.low %v1346_v59, %v224_v57  ;;  %v1380_v5 = vmul.u32.u64.high %v1346_v59, %v224_v57, %v1379_v1  ;;  %v1383_v7 = vmul.u32.u64.low %v1346_v59, %v220_v56  ;;  %v1384_v9 = vmul.u32.u64.high %v1346_v59, %v220_v56, %v1383_v7 }
  0xf5   :  { %v611_v12 = vor.u32 %v610_v63, %v609_v50  ;;  %v613_v14 = vshrl.u32 %v1229_v8, %v604_v27  ;;  %v605_v55 = vshrl.u32 %v1226_v0, %v604_v27  ;;  %v615_v16 = vshll.u32 %v1229_v8, %v603_v3 }
  0xf6   :  { %v616_v17 = vshrl.u32 %v1230_v10, %v604_v27  ;;  %v619_v20 = vshrl.u32 %v1231_v18, %v604_v27  ;;  %v232_v21 = vmul.u32 %v1346_v59, %v216_v52  ;;  %v618_v25 = vshll.u32 %v1230_v10, %v603_v3 }
  0xf7   :  { %v614_v24 = vor.u32 %v613_v14, %v612_v13  ;;  %vm621_vm7 = vcmp.lt.s32.totalorder %v1354_v2, 1  ;;  %vm234_vm8 = vc.u32 %v1380_v5, %v1383_v7  ;;  %v235_v29 = vadd.s32 1, %v1384_v9 }
  0xf8   :  { %v617_v30 = vor.u32 %v616_v17, %v615_v16  ;;  %vm622_vm9 = vcmp.lt.s32.totalorder %v1354_v2, 2  ;;  %v620_v31 = vor.u32 %v619_v20, %v618_v25  ;;  %vm623_vm10 = vcmp.lt.s32.totalorder %v1354_v2, 3 }
  0xf9   :  { %vm624_vm11 = vcmp.lt.s32.totalorder %v1354_v2, 4  ;;  %v629_v27 = vsel %vm621_vm7, %v608_v11, %v611_v12  ;;  %v236_v59 = vsel %vm234_vm8, %v235_v29, %v1384_v9  ;;  %v633_v35 = vsel %vm621_vm7, %v611_v12, %v614_v24 }
  0xfa   :  { %v626_v33 = vsel %vm624_vm11, %v614_v24, 2102212464  ;;  %v630_v3 = vsel %vm624_vm11, %v617_v30, 920167782  ;;  %v237_v36 = vadd.s32 %v236_v59, %v232_v21  ;;  %v625_v37 = vsel %vm621_vm7, %v605_v55, %v608_v11 }
  0xfb   :  { %v631_v39 = vsel %vm623_vm10, %v614_v24, %v630_v3  ;;  %v634_v41 = vsel %vm624_vm11, %v620_v31, 1326507024  ;;  %v627_v45 = vsel %vm623_vm10, %v611_v12, %v626_v33  ;;  %v1077_v48 = vadd.s32 4294967169, %v1351_v62 }
  0xfc   :  { %v632_v46 = vsel %vm622_vm9, %v629_v27, %v631_v39  ;;  %v635_v47 = vsel %vm623_vm10, %v617_v30, %v634_v41  ;;  %v238_v50 = vadd.s32 536870912, %v237_v36  ;;  %v1001_v9 = vmul.f32 %v1339_v53, %v1339_v53 }
  0xfd   :  { %v636_v52 = vsel %vm622_vm9, %v633_v35, %v635_v47  ;;  %v1409_v56 = vmul.u32.u64.low %v1348_v60, %v632_v46  ;;  %v1410_v57 = vmul.u32.u64.high %v1348_v60, %v632_v46, %v1409_v56  ;;  %v290_v11 = vadd.s32 1, %v1077_v48 }
  0xfe   :  { %v1413_v63 = vmul.u32.u64.low %v1348_v60, %v636_v52  ;;  %v1414_v1 = vmul.u32.u64.high %v1348_v60, %v636_v52, %v1413_v63  ;;  %v1418_v12 = vshrl.u32 %v238_v50, 30  ;;  %v628_v62 = vsel %vm622_vm9, %v625_v37, %v627_v45 }
  0xff   :  { %v287_v13 = vand.u32 8388607, %v280_v61  ;;  %vm291_vm12 = vcmp.gt.s32.totalorder %v290_v11, 0  ;;  %v647_v55 = vadd.s32 1, %v1410_v57  ;;  %v1428_v16 = vmul.f32 %v1344_v58, %v1344_v58  ;;  %v1439_v58 = vpop.f32.mrb[7].mxu0 }
 0x100   :  { %v240_v14 = vshll.u32 %v1418_v12, 30  ;;  %v292_v17 = vsel %vm291_vm12, %v290_v11, 0  ;;  %v644_v53 = vmul.u32 %v1348_v60, %v628_v62  ;;  %vm646_vm13 = vc.u32 %v1414_v1, %v1409_v56 }
 0x101   :  { %v1009_v20 = vsub.f32 0.0, %v1001_v9  ;;  %v294_v2 = vand.u32 31, %v292_v17  ;;  %v648_v24 = vsel %vm646_vm13, %v647_v55, %v1410_v57  ;;  %v288_v25 = vor.u32 8388608, %v287_v13 }
 0x102   :  { %v1432_v21 = vsub.s32 %v237_v36, %v240_v14  ;;  %v1437_v29 = vadd.f32 %v1314_v32, %v1302_v19  ;;  %v649_v30 = vadd.s32 %v648_v24, %v644_v53  ;;  %v1013_v33 = vsub.f32 0.0, %v1428_v16 }
 0x103   :  { %v295_v31 = vsub.s32 32, %v294_v2  ;;  %v1442_v59 = vmul.f32 1.442695, %v1009_v20  ;;  %v233_v3 = vadd.s32 %v1383_v7, %v1380_v5  ;;  %v1448_v36 = vshll.u32 %v288_v25, 8 }
 0x104   :  { %v243_v27 = vsub.s32 0, %v1432_v21  ;;  %v650_v60 = vadd.s32 536870912, %v649_v30  ;;  %v692_v32 = vand.u32 2147483647, %v1437_v29  ;;  %v263_v37 = vsub.s32 4, %v1418_v12 }
 0x105   :  { %v304_v41 = vshrl.u32 %v1229_v8, %v295_v31  ;;  %v695_v45 = vand.u32 2139095040, %v1437_v29  ;;  %v1457_v47 = vadd.s32 %v1409_v56, %v1414_v1  ;;  %v298_v5 = vshrl.u32 %v1227_v4, %v295_v31 }
 0x106   :  { %v1074_v35 = vmin.u32 %v243_v27, %v1432_v21  ;;  %v1452_v39 = vshrl.u32 %v650_v60, 30  ;;  %v301_v7 = vshrl.u32 %v1228_v6, %v295_v31  ;;  %v303_v50 = vshll.u32 %v1228_v6, %v294_v2 }
 0x107   :  { %v307_v52 = vshrl.u32 %v1230_v10, %v295_v31  ;;  %v310_v57 = vshrl.u32 %v1231_v18, %v295_v31  ;;  %v293_v9 = vshrl.u32 %v292_v17, 5  ;;  %v297_v11 = vshll.u32 %v1226_v0, %v294_v2 }
 0x108   :  { %v245_v46 = vclz %v1074_v35  ;;  %v652_v48 = vshll.u32 %v1452_v39, 30  ;;  %v300_v62 = vshll.u32 %v1227_v4, %v294_v2  ;;  %v305_v1 = vor.u32 %v304_v41, %v303_v50 }
 0x109   :  { %v306_v13 = vshll.u32 %v1229_v8, %v294_v2  ;;  %v309_v14 = vshll.u32 %v1230_v10, %v294_v2  ;;  %v296_v55 = vshrl.u32 %v1226_v0, %v295_v31  ;;  %v299_v53 = vor.u32 %v298_v5, %v297_v11 }
 0x10a   :  { %v1075_v63 = vadd.s32 4294967294, %v245_v46  ;;  %v1467_v56 = vsub.s32 %v649_v30, %v652_v48  ;;  %v302_v20 = vor.u32 %v301_v7, %v300_v62  ;;  %vm312_vm0 = vcmp.lt.s32.totalorder %v293_v9, 1  ;;  %v1477_v7 = vpop.f32.mrb[7].mxu1 }
 0x10b   :  { %v308_v25 = vor.u32 %v307_v52, %v306_v13  ;;  %v311_v27 = vor.u32 %v310_v57, %v309_v14  ;;  %vm315_vm1 = vcmp.lt.s32.totalorder %v293_v9, 4  ;;  %vm313_vm2 = vcmp.lt.s32.totalorder %v293_v9, 2 }
 0x10c   :  { %vm1076_vm14 = vcmp.lt.s32.totalorder %v1075_v63, 0  ;;  %v655_v17 = vsub.s32 0, %v1467_v56  ;;  %vm314_vm3 = vcmp.lt.s32.totalorder %v293_v9, 3  ;;  %v317_v2 = vsel %vm315_vm1, %v305_v1, 2102212464 }
 0x10d   :  { %v248_v24 = vsel %vm1076_vm14, 0, %v1075_v63  ;;  %v320_v5 = vsel %vm312_vm0, %v299_v53, %v302_v20  ;;  %vm1481_vm4 = vcmp.le.f32.partialorder %v177_v26, 0.7853982  ;;  %v321_v52 = vsel %vm315_vm1, %v308_v25, 920167782 }
 0x10e   :  { %v249_v60 = vsub.s32 32, %v248_v24  ;;  %v253_v30 = vsub.s32 4294967266, %v248_v24  ;;  %v1090_v35 = vmin.u32 %v655_v17, %v1467_v56  ;;  %v250_v31 = vshll.u32 %v1432_v21, %v248_v24 }
 0x10f   :  { %v324_v57 = vsel %vm312_vm0, %v302_v20, %v305_v1  ;;  %v325_v63 = vsel %vm315_vm1, %v311_v27, 1326507024  ;;  %v322_v21 = vsel %vm314_vm3, %v305_v1, %v321_v52  ;;  %vm591_vm5 = vcmp.lt.s32.totalorder %v1308_v23, 0 }
 0x110   :  { %v251_v41 = vshrl.u32 %v233_v3, %v249_v60  ;;  %v254_v46 = vadd.s32 127, %v253_v30  ;;  %v657_v50 = vclz %v1090_v35  ;;  %v326_v3 = vsel %vm314_vm3, %v308_v25, %v325_v63 }
 0x111   :  { %v316_v14 = vsel %vm312_vm0, %v296_v55, %v299_v53  ;;  %v323_v26 = vsel %vm313_vm2, %v320_v5, %v322_v21  ;;  %v327_v24 = vsel %vm313_vm2, %v324_v57, %v326_v3  ;;  %v318_v60 = vsel %vm314_vm3, %v302_v20, %v317_v2 }
 0x112   :  { %v252_v11 = vor.u32 %v251_v41, %v250_v31  ;;  %v255_v62 = vshll.u32 %v254_v46, 23  ;;  %v1091_v13 = vadd.s32 4294967294, %v657_v50  ;;  %v696_v35 = vshrl.u32 %v695_v45, 23 }
 0x113   :  { %v1494_v27 = vmul.u32.u64.low %v1448_v36, %v327_v24  ;;  %v1495_v30 = vmul.u32.u64.high %v1448_v36, %v327_v24, %v1494_v27  ;;  %v1498_v1 = vmul.u32.u64.low %v1448_v36, %v323_v26  ;;  %v1499_v25 = vmul.u32.u64.high %v1448_v36, %v323_v26, %v1498_v1 }
 0x114   :  { %v256_v17 = vor.u32 4788187, %v255_v62  ;;  %vm1092_vm6 = vcmp.lt.s32.totalorder %v1091_v13, 0  ;;  %v259_v55 = vcvt.s32.f32 %v252_v11  ;;  %v264_v53 = vsel %vm179_vm15, %v263_v37, %v1418_v12 }
 0x115   :  { %vm1509_vm7 = vcmp.le.f32.partialorder %v589_v28, 0.7853982  ;;  %v660_v2 = vsel %vm1092_vm6, 0, %v1091_v13  ;;  %v319_v5 = vsel %vm313_vm2, %v316_v14, %v318_v60  ;;  %v1093_v45 = vadd.s32 4294967169, %v696_v35 }
 0x116   :  { %v257_v31 = vand.u32 2147483647, %v256_v17  ;;  %v661_v41 = vsub.s32 32, %v660_v2  ;;  %v665_v46 = vsub.s32 4294967266, %v660_v2  ;;  %v662_v52 = vshll.u32 %v1467_v56, %v660_v2 }
 0x117   :  { %v675_v57 = vsub.s32 4, %v1452_v39  ;;  %vm337_vm8 = vc.u32 %v1495_v30, %v1498_v1  ;;  %v338_v37 = vadd.s32 1, %v1499_v25  ;;  %v702_v63 = vadd.s32 1, %v1093_v45 }
 0x118   :  { %v260_v50 = vmul.f32 %v259_v55, %v257_v31  ;;  %v663_v12 = vshrl.u32 %v1457_v47, %v661_v41  ;;  %v666_v28 = vadd.s32 127, %v665_v46  ;;  %v266_v9 = vsel %vm1481_vm4, 0, %v264_v53 }
 0x119   :  { %v335_v62 = vmul.u32 %v1448_v36, %v319_v5  ;;  %v699_v56 = vand.u32 8388607, %v692_v32  ;;  %v339_v13 = vsel %vm337_vm8, %v338_v37, %v1499_v25  ;;  %vm703_vm9 = vcmp.gt.s32.totalorder %v702_v63, 0 }
 0x11a   :  { %v261_v11 = vxor.u32 2147483648, %v260_v50  ;;  %v664_v21 = vor.u32 %v663_v12, %v662_v52  ;;  %v667_v3 = vshll.u32 %v666_v28, 23  ;;  %v676_v14 = vsel %vm591_vm5, %v675_v57, %v1452_v39 }
 0x11b   :  { %v340_v26 = vadd.s32 %v339_v13, %v335_v62  ;;  %v704_v24 = vsel %vm703_vm9, %v702_v63, 0  ;;  %v1534_v17 = vand.u32 3, %v266_v9  ;;  %v1025_v27 = vmul.f32 1.442695, %v1013_v33 }
 0x11c   :  { %v262_v47 = vsel %vm179_vm15, %v261_v11, %v260_v50  ;;  %v668_v60 = vor.u32 4788187, %v667_v3  ;;  %v700_v35 = vor.u32 8388608, %v699_v56  ;;  %v706_v31 = vand.u32 31, %v704_v24 }
 0x11d   :  { %v265_v36 = vsel %vm1481_vm4, %v1305_v22, %v262_v47  ;;  %v341_v25 = vadd.s32 536870912, %v340_v26  ;;  %v671_v53 = vcvt.s32.f32 %v664_v21  ;;  %v678_v39 = vsel %vm1509_vm7, 0, %v676_v14 }
 0x11e   :  { %1153 = vcosq.f32 %v265_v36  ;;  %v669_v55 = vand.u32 2147483647, %v668_v60  ;;  %v707_v2 = vsub.s32 32, %v706_v31  ;;  %v1545_v16 = vadd.f32 %v1316_v34, %v1327_v42 }
 0x11f   :  { %1155 = vsinq.f32 %v265_v36  ;;  %v1541_v48 = vshrl.u32 %v341_v25, 30  ;;  %vm275_vm10 = vcmp.eq.s32.totalorder %v1534_v17, 2  ;;  %v1548_v33 = vand.u32 3, %v678_v39 }
 0x120   :  { %1157 = vpow2.f32 %v1442_v59  ;;  %v672_v41 = vmul.f32 %v671_v53, %v669_v55  ;;  %v710_v5 = vshrl.u32 %v1227_v4, %v707_v2  ;;  %v1552_v45 = vshll.u32 %v700_v35, 8 }
 0x121   :  { %1159 = vpow2.f32 %v1025_v27  ;;  %v343_v46 = vshll.u32 %v1541_v48, 30  ;;  %vm272_vm11 = vcmp.eq.s32.totalorder %v1534_v17, 0  ;;  %v713_v50 = vshrl.u32 %v1228_v6, %v707_v2 }
 0x122   :  { %v673_v59 = vxor.u32 2147483648, %v672_v41  ;;  %v716_v52 = vshrl.u32 %v1229_v8, %v707_v2  ;;  %v719_v34 = vshrl.u32 %v1230_v10, %v707_v2  ;;  %vm271_vm12 = vcmp.lt.s32.totalorder %v1534_v17, 2 }
 0x123   :  { %v1559_v57 = vsub.s32 %v340_v26, %v343_v46  ;;  %v1561_v12 = vshrl.u32 %v704_v24, 5  ;;  %v715_v28 = vshll.u32 %v1228_v6, %v706_v31  ;;  %v722_v37 = vshrl.u32 %v1231_v18, %v707_v2 }
 0x124   :  { %vm269_vm13 = vweird.f32 %v1305_v22  ;;  %v674_v63 = vsel %vm591_vm5, %v673_v59, %v672_v41  ;;  %v709_v11 = vshll.u32 %v1226_v0, %v706_v31  ;;  %v712_v9 = vshll.u32 %v1227_v4, %v706_v31 }
 0x125   :  { %v718_v62 = vshll.u32 %v1229_v8, %v706_v31  ;;  %v677_v56 = vsel %vm1509_vm7, %v1308_v23, %v674_v63  ;;  %v346_v21 = vsub.s32 0, %v1559_v57  ;;  %v717_v3 = vor.u32 %v716_v52, %v715_v28 }
 0x126   :  { %v721_v13 = vshll.u32 %v1230_v10, %v706_v31  ;;  %1161 = vcosq.f32 %v677_v56  ;;  %v711_v47 = vor.u32 %v710_v5, %v709_v11  ;;  %v714_v14 = vor.u32 %v713_v50, %v712_v9 }
 0x127   :  { %v720_v26 = vor.u32 %v719_v34, %v718_v62  ;;  %1163 = vsinq.f32 %v677_v56  ;;  %v1078_v36 = vmin.u32 %v346_v21, %v1559_v57  ;;  %vm724_vm14 = vcmp.lt.s32.totalorder %v1561_v12, 1 }
 0x128   :  { %v1154_v24 = vpop.eup %1153  ;;  %v723_v60 = vor.u32 %v722_v37, %v721_v13  ;;  %v708_v20 = vshrl.u32 %v1226_v0, %v707_v2  ;;  %vm725_vm15 = vcmp.lt.s32.totalorder %v1561_v12, 2  ;;  %vm727_vm0 = vcmp.lt.s32.totalorder %v1561_v12, 4 }
 0x129   :  { %v1156_v27 = vpop.eup %1155  ;;  %v276_v25 = vxor.u32 2147483648, %v1154_v24  ;;  %v348_v55 = vclz %v1078_v36  ;;  %vm726_vm1 = vcmp.lt.s32.totalorder %v1561_v12, 3  ;;  %v729_v53 = vsel %vm727_vm0, %v717_v3, 2102212464 }
 0x12a   :  { %v1158_v35 = vpop.eup %1157  ;;  %v273_v31 = vxor.u32 2147483648, %v1156_v27  ;;  %v732_v46 = vsel %vm724_vm14, %v711_v47, %v714_v14  ;;  %v733_v5 = vsel %vm727_vm0, %v720_v26, 920167782  ;;  %v736_v2 = vsel %vm724_vm14, %v714_v14, %v717_v3 }
 0x12b   :  { %v1160_v39 = vpop.eup %1159  ;;  %v277_v41 = vsel %vm275_vm10, %v276_v25, %v1156_v27  ;;  %v1079_v50 = vadd.s32 4294967294, %v348_v55  ;;  %v734_v52 = vsel %vm726_vm1, %v717_v3, %v733_v5  ;;  %v737_v34 = vsel %vm727_vm0, %v723_v60, 1326507024 }
 0x12c   :  { %v274_v59 = vsel %vm272_vm11, %v1154_v24, %v273_v31  ;;  %vm683_vm2 = vcmp.lt.s32.totalorder %v1548_v33, 2  ;;  %v728_v37 = vsel %vm724_vm14, %v708_v20, %v711_v47  ;;  %v730_v63 = vsel %vm726_vm1, %v714_v14, %v729_v53 }
 0x12d   :  { %v278_v28 = vsel %vm271_vm12, %v274_v59, %v277_v41  ;;  %v738_v11 = vsel %vm726_vm1, %v720_v26, %v737_v34  ;;  %vm681_vm3 = vweird.f32 %v1308_v23  ;;  %vm1080_vm4 = vcmp.lt.s32.totalorder %v1079_v50, 0 }
 0x12e   :  { %v279_v9 = vsel %vm269_vm13, nan, %v278_v28  ;;  %v735_v62 = vsel %vm725_vm15, %v732_v46, %v734_v52  ;;  %v739_v17 = vsel %vm725_vm15, %v736_v2, %v738_v11  ;;  %v351_v21 = vsel %vm1080_vm4, 0, %v1079_v50 }
 0x12f   :  { %v1033_v56 = vmul.f32 %v1158_v35, %v279_v9  ;;  %v1603_v3 = vmul.u32.u64.low %v1552_v45, %v739_v17  ;;  %v1604_v13 = vmul.u32.u64.high %v1552_v45, %v739_v17, %v1603_v3  ;;  %vm684_vm5 = vcmp.eq.s32.totalorder %v1548_v33, 0 }
 0x130   :  { %vm282_vm6 = vcmp.lt.s32.totalorder %v1325_v40, 0  ;;  %v336_v22 = vadd.s32 %v1498_v1, %v1495_v30  ;;  %v352_v47 = vsub.s32 32, %v351_v21  ;;  %v356_v14 = vsub.s32 4294967266, %v351_v21  ;;  %v1162_v26 = vpop.eup %1161 }
 0x131   :  { %1041 = vst [vmem:[#allocation2] sm:$0xff] %v1033_v56  ;;  %v353_v24 = vshll.u32 %v1559_v57, %v351_v21  ;;  %v731_v36 = vsel %vm725_vm15, %v728_v37, %v730_v63  ;;  %v1614_v60 = vmul.u32.u64.low %v1552_v45, %v735_v62  ;;  %v1615_v27 = vmul.u32.u64.high %v1552_v45, %v735_v62, %v1614_v60  ;;  %v1164_v25 = vpop.eup %1163 }
 0x132   :  { %v688_v20 = vxor.u32 2147483648, %v1162_v26  ;;  %v354_v35 = vshrl.u32 %v336_v22, %v352_v47  ;;  %v357_v31 = vadd.s32 127, %v356_v14  ;;  %v1620_v30 = vadd.f32 %v1329_v43, %v1302_v19 }
 0x133   :  { %v685_v1 = vxor.u32 2147483648, %v1164_v25  ;;  %vm687_vm7 = vcmp.eq.s32.totalorder %v1548_v33, 2  ;;  %v366_v57 = vsub.s32 4, %v1541_v48  ;;  %v1002_v12 = vmul.f32 %v1545_v16, %v1545_v16 }
 0x134   :  { %v689_v55 = vsel %vm687_vm7, %v688_v20, %v1164_v25  ;;  %v355_v53 = vor.u32 %v354_v35, %v353_v24  ;;  %v358_v41 = vshll.u32 %v357_v31, 23  ;;  %vm749_vm8 = vc.u32 %v1604_v13, %v1614_v60 }
 0x135   :  { %v686_v46 = vsel %vm684_vm5, %v1162_v26, %v685_v1  ;;  %v747_v43 = vmul.u32 %v1552_v45, %v731_v36  ;;  %v750_v5 = vadd.s32 1, %v1615_v27  ;;  %v1634_v2 = vadd.f32 %v1331_v44, %v1302_v19 }
 0x136   :  { %v690_v16 = vsel %vm683_vm2, %v686_v46, %v689_v55  ;;  %v359_v59 = vor.u32 4788187, %v358_v41  ;;  %v383_v50 = vand.u32 2147483647, %v1620_v30  ;;  %v386_v52 = vand.u32 2139095040, %v1620_v30 }
 0x137   :  { %v691_v34 = vsel %vm681_vm3, nan, %v690_v16  ;;  %v362_v28 = vcvt.s32.f32 %v355_v53  ;;  %v751_v45 = vsel %vm749_vm8, %v750_v5, %v1615_v27  ;;  %v1010_v37 = vsub.f32 0.0, %v1002_v12 }
 0x138   :  { %v1037_v63 = vmul.f32 %v1160_v39, %v691_v34  ;;  %v360_v11 = vand.u32 2147483647, %v359_v59  ;;  %v752_v9 = vadd.s32 %v751_v45, %v747_v43  ;;  %v387_v44 = vshrl.u32 %v386_v52, 23 }
 0x139   :  { %v367_v33 = vsel %vm282_vm6, %v366_v57, %v1541_v48  ;;  %v163_v62 = vadd.f32 %v1322_v38, %v1327_v42  ;;  %v798_v17 = vand.u32 2139095040, %v1634_v2  ;;  %v390_v3 = vand.u32 8388607, %v383_v50 }
 0x13a   :  { %1045 = vst [vmem:[#allocation2 + $0x20] sm:$0xff] %v1037_v63  ;;  %v363_v23 = vmul.f32 %v362_v28, %v360_v11  ;;  %v753_v56 = vadd.s32 536870912, %v752_v9  ;;  %v1081_v21 = vadd.s32 4294967169, %v387_v44  ;;  %v1019_v39 = vmul.f32 1.442695, %v1010_v37 }
 0x13b   :  { %v795_v22 = vand.u32 2147483647, %v1634_v2  ;;  %v799_v47 = vshrl.u32 %v798_v17, 23  ;;  %vm1654_vm9 = vcmp.le.f32.partialorder %v280_v61, 0.7853982  ;;  %v1662_v36 = vmul.f32 %v163_v62, %v163_v62 }
 0x13c   :  { %v364_v38 = vxor.u32 2147483648, %v363_v23  ;;  %v1658_v14 = vshrl.u32 %v753_v56, 30  ;;  %v393_v26 = vadd.s32 1, %v1081_v21  ;;  %v369_v24 = vsel %vm1654_vm9, 0, %v367_v33 }
 0x13d   :  { %v1097_v27 = vadd.s32 4294967169, %v799_v47  ;;  %v391_v35 = vor.u32 8388608, %v390_v3  ;;  %1165 = vpow2.f32 %v1019_v39  ;;  %v1672_v1 = vand.u32 8388607, %v795_v22 }
 0x13e   :  { %v365_v25 = vsel %vm282_vm6, %v364_v38, %v363_v23  ;;  %v755_v20 = vshll.u32 %v1658_v14, 30  ;;  %vm394_vm10 = vcmp.gt.s32.totalorder %v393_v26, 0  ;;  %v1674_v57 = vand.u32 3, %v369_v24 }
 0x13f   :  { %v368_v61 = vsel %vm1654_vm9, %v1325_v40, %v365_v25  ;;  %v395_v31 = vsel %vm394_vm10, %v393_v26, 0  ;;  %v1680_v41 = vadd.s32 1, %v1097_v27  ;;  %v748_v46 = vadd.s32 %v1614_v60, %v1604_v13 }
 0x140   :  { %1167 = vcosq.f32 %v368_v61  ;;  %v1676_v12 = vsub.s32 %v752_v9, %v755_v20  ;;  %v1678_v55 = vshrl.u32 %v395_v31, 5  ;;  %v397_v53 = vand.u32 31, %v395_v31 }
 0x141   :  { %1169 = vsinq.f32 %v368_v61  ;;  %v1014_v5 = vsub.f32 0.0, %v1662_v36  ;;  %v1686_v16 = vshll.u32 %v391_v35, 8  ;;  %v778_v59 = vsub.s32 4, %v1658_v14 }
 0x142   :  { %v758_v43 = vsub.s32 0, %v1676_v12  ;;  %v398_v52 = vsub.s32 32, %v397_v53  ;;  %vm415_vm11 = vcmp.lt.s32.totalorder %v1678_v55, 1  ;;  %v803_v34 = vor.u32 8388608, %v1672_v1 }
 0x143   :  { %vm378_vm12 = vcmp.eq.s32.totalorder %v1674_v57, 2  ;;  %v400_v45 = vshll.u32 %v1226_v0, %v397_v53  ;;  %v403_v13 = vshll.u32 %v1227_v4, %v397_v53  ;;  %v406_v60 = vshll.u32 %v1228_v6, %v397_v53 }
 0x144   :  { %v1094_v28 = vmin.u32 %v758_v43, %v1676_v12  ;;  %vm375_vm13 = vcmp.eq.s32.totalorder %v1674_v57, 0  ;;  %v399_v37 = vshrl.u32 %v1226_v0, %v398_v52  ;;  %v401_v63 = vshrl.u32 %v1227_v4, %v398_v52 }
 0x145   :  { %v404_v11 = vshrl.u32 %v1228_v6, %v398_v52  ;;  %v407_v9 = vshrl.u32 %v1229_v8, %v398_v52  ;;  %vm806_vm14 = vcmp.gt.s32.totalorder %v1680_v41, 0  ;;  %vm374_vm15 = vcmp.lt.s32.totalorder %v1674_v57, 2 }
 0x146   :  { %v760_v44 = vclz %v1094_v28  ;;  %v409_v33 = vshll.u32 %v1229_v8, %v397_v53  ;;  %v410_v62 = vshrl.u32 %v1230_v10, %v398_v52  ;;  %v412_v17 = vshll.u32 %v1230_v10, %v397_v53 }
 0x147   :  { %vm372_vm0 = vweird.f32 %v1325_v40  ;;  %v402_v23 = vor.u32 %v401_v63, %v400_v45  ;;  %v405_v56 = vor.u32 %v404_v11, %v403_v13  ;;  %v408_v21 = vor.u32 %v407_v9, %v406_v60  ;;  %v1166_v48 = vpop.eup %1165 }
 0x148   :  { %v413_v3 = vshrl.u32 %v1231_v18, %v398_v52  ;;  %v1095_v39 = vadd.s32 4294967294, %v760_v44  ;;  %v411_v47 = vor.u32 %v410_v62, %v409_v33  ;;  %vm416_vm1 = vcmp.lt.s32.totalorder %v1678_v55, 2 }
 0x149   :  { %vm418_vm2 = vcmp.lt.s32.totalorder %v1678_v55, 4  ;;  %vm417_vm3 = vcmp.lt.s32.totalorder %v1678_v55, 3  ;;  %v419_v26 = vsel %vm415_vm11, %v399_v37, %v402_v23  ;;  %v423_v20 = vsel %vm415_vm11, %v402_v23, %v405_v56 }
 0x14a   :  { %v414_v38 = vor.u32 %v413_v3, %v412_v17  ;;  %v420_v24 = vsel %vm418_vm2, %v408_v21, 2102212464  ;;  %v1168_v27 = vpop.eup %1167  ;;  %vm1096_vm4 = vcmp.lt.s32.totalorder %v1095_v39, 0  ;;  %v424_v35 = vsel %vm418_vm2, %v411_v47, 920167782 }
 0x14b   :  { %v421_v25 = vsel %vm417_vm3, %v405_v56, %v420_v24  ;;  %v1170_v61 = vpop.eup %1169  ;;  %v379_v31 = vxor.u32 2147483648, %v1168_v27  ;;  %v763_v53 = vsel %vm1096_vm4, 0, %v1095_v39  ;;  %v425_v43 = vsel %vm417_vm3, %v408_v21, %v424_v35 }
 0x14c   :  { %v427_v52 = vsel %vm415_vm11, %v405_v56, %v408_v21  ;;  %v376_v28 = vxor.u32 2147483648, %v1170_v61  ;;  %v764_v45 = vsub.s32 32, %v763_v53  ;;  %v768_v13 = vsub.s32 4294967266, %v763_v53 }
 0x14d   :  { %v422_v60 = vsel %vm416_vm1, %v419_v26, %v421_v25  ;;  %v380_v37 = vsel %vm378_vm12, %v379_v31, %v1170_v61  ;;  %v765_v63 = vshll.u32 %v1676_v12, %v763_v53  ;;  %v426_v11 = vsel %vm416_vm1, %v423_v20, %v425_v43 }
 0x14e   :  { %v428_v9 = vsel %vm418_vm2, %v414_v38, 1326507024  ;;  %v377_v44 = vsel %vm375_vm13, %v1168_v27, %v376_v28  ;;  %v766_v33 = vshrl.u32 %v748_v46, %v764_v45  ;;  %v769_v62 = vadd.s32 127, %v768_v13 }
 0x14f   :  { %v429_v17 = vsel %vm417_vm3, %v411_v47, %v428_v9  ;;  %v381_v23 = vsel %vm374_vm15, %v377_v44, %v380_v37  ;;  %v1743_v56 = vmul.u32.u64.low %v1686_v16, %v426_v11  ;;  %v1744_v21 = vmul.u32.u64.high %v1686_v16, %v426_v11, %v1743_v56 }
 0x150   :  { %v430_v12 = vsel %vm416_vm1, %v427_v52, %v429_v17  ;;  %v382_v3 = vsel %vm372_vm0, nan, %v381_v23  ;;  %v767_v39 = vor.u32 %v766_v33, %v765_v63  ;;  %v770_v46 = vshll.u32 %v769_v62, 23 }
 0x151   :  { %v807_v47 = vsel %vm806_vm14, %v1680_v41, 0  ;;  %vm1754_vm5 = vcmp.le.f32.partialorder %v692_v32, 0.7853982  ;;  %v1034_v55 = vmul.f32 %v1166_v48, %v382_v3  ;;  %vm694_vm6 = vcmp.lt.s32.totalorder %v1437_v29, 0 }
 0x152   :  { %v1759_v38 = vmul.u32.u64.low %v1686_v16, %v430_v12  ;;  %v1760_v26 = vmul.u32.u64.high %v1686_v16, %v430_v12, %v1759_v38  ;;  %v771_v40 = vor.u32 4788187, %v770_v46  ;;  %v1027_v24 = vmul.f32 1.442695, %v1014_v5 }
 0x153   :  { %v809_v27 = vand.u32 31, %v807_v47  ;;  %v779_v32 = vsel %vm694_vm6, %v778_v59, %v1658_v14  ;;  %1042 = vst [vmem:[#allocation2 + $0x8] sm:$0xff] %v1034_v55  ;;  %v438_v41 = vmul.u32 %v1686_v16, %v422_v60  ;;  %v441_v48 = vadd.s32 1, %v1744_v21 }
 0x154   :  { %v1774_v25 = vshll.u32 %v803_v34, 8  ;;  %v772_v20 = vand.u32 2147483647, %v771_v40  ;;  %v774_v35 = vcvt.s32.f32 %v767_v39  ;;  %v808_v36 = vshrl.u32 %v807_v47, 5 }
 0x155   :  { %v810_v5 = vsub.s32 32, %v809_v27  ;;  %vm440_vm7 = vc.u32 %v1760_v26, %v1743_v56  ;;  %v812_v61 = vshll.u32 %v1226_v0, %v809_v27  ;;  %v815_v14 = vshll.u32 %v1227_v4, %v809_v27 }
 0x156   :  { %v818_v59 = vshll.u32 %v1228_v6, %v809_v27  ;;  %v775_v16 = vmul.f32 %v774_v35, %v772_v20  ;;  %v442_v31 = vsel %vm440_vm7, %v441_v48, %v1744_v21  ;;  %v821_v34 = vshll.u32 %v1229_v8, %v809_v27 }
 0x157   :  { %v813_v1 = vshrl.u32 %v1227_v4, %v810_v5  ;;  %v443_v53 = vadd.s32 %v442_v31, %v438_v41  ;;  %v816_v43 = vshrl.u32 %v1228_v6, %v810_v5  ;;  %v819_v52 = vshrl.u32 %v1229_v8, %v810_v5 }
 0x158   :  { %v822_v28 = vshrl.u32 %v1230_v10, %v810_v5  ;;  %v776_v45 = vxor.u32 2147483648, %v775_v16  ;;  %v824_v60 = vshll.u32 %v1230_v10, %v809_v27  ;;  %v825_v37 = vshrl.u32 %v1231_v18, %v810_v5 }
 0x159   :  { %v814_v13 = vor.u32 %v813_v1, %v812_v61  ;;  %v444_v63 = vadd.s32 536870912, %v443_v53  ;;  %v817_v11 = vor.u32 %v816_v43, %v815_v14  ;;  %v820_v9 = vor.u32 %v819_v52, %v818_v59 }
 0x15a   :  { %v823_v44 = vor.u32 %v822_v28, %v821_v34  ;;  %v777_v33 = vsel %vm694_vm6, %v776_v45, %v775_v16  ;;  %v781_v62 = vsel %vm1754_vm5, 0, %v779_v32  ;;  %v826_v17 = vor.u32 %v825_v37, %v824_v60 }
 0x15b   :  { %vm827_vm8 = vcmp.lt.s32.totalorder %v808_v36, 1  ;;  %v780_v23 = vsel %vm1754_vm5, %v1437_v29, %v777_v33  ;;  %v445_v12 = vshrl.u32 %v444_v63, 30  ;;  %v811_v21 = vshrl.u32 %v1226_v0, %v810_v5 }
 0x15c   :  { %vm830_vm9 = vcmp.lt.s32.totalorder %v808_v36, 4  ;;  %1171 = vcosq.f32 %v780_v23  ;;  %v835_v39 = vsel %vm827_vm8, %v814_v13, %v817_v11  ;;  %vm829_vm10 = vcmp.lt.s32.totalorder %v808_v36, 3 }
 0x15d   :  { %v832_v3 = vsel %vm830_vm9, %v820_v9, 2102212464  ;;  %v836_v46 = vsel %vm830_vm9, %v823_v44, 920167782  ;;  %1173 = vsinq.f32 %v780_v23  ;;  %v446_v47 = vshll.u32 %v445_v12, 30 }
 0x15e   :  { %v839_v55 = vsel %vm827_vm8, %v817_v11, %v820_v9  ;;  %vm828_vm11 = vcmp.lt.s32.totalorder %v808_v36, 2  ;;  %v831_v38 = vsel %vm827_vm8, %v811_v21, %v814_v13  ;;  %v837_v40 = vsel %vm829_vm10, %v820_v9, %v836_v46 }
 0x15f   :  { %v840_v27 = vsel %vm830_vm9, %v826_v17, 1326507024  ;;  %v1797_v32 = vsub.s32 %v443_v53, %v446_v47  ;;  %v833_v57 = vsel %vm829_vm10, %v817_v11, %v832_v3  ;;  %v838_v41 = vsel %vm828_vm11, %v835_v39, %v837_v40 }
 0x160   :  { %v841_v48 = vsel %vm829_vm10, %v823_v44, %v840_v27  ;;  %v785_v20 = vand.u32 3, %v781_v62  ;;  %v1800_v5 = vmul.u32.u64.low %v1774_v25, %v838_v41  ;;  %v1801_v61 = vmul.u32.u64.high %v1774_v25, %v838_v41, %v1800_v5 }
 0x161   :  { %v842_v35 = vsel %vm828_vm11, %v839_v55, %v841_v48  ;;  %v449_v14 = vsub.s32 0, %v1797_v32  ;;  %v1811_v16 = vadd.f32 %v1341_v54, %v1302_v19  ;;  %1175 = vpow2.f32 %v1027_v24 }
 0x162   :  { %v1806_v59 = vmul.u32.u64.low %v1774_v25, %v842_v35  ;;  %v1807_v36 = vmul.u32.u64.high %v1774_v25, %v842_v35, %v1806_v59  ;;  %v834_v31 = vsel %vm828_vm11, %v831_v38, %v833_v57  ;;  %v145_v1 = vadd.f32 %v1333_v49, %v1327_v42 }
 0x163   :  { %vm784_vm12 = vweird.f32 %v1437_v29  ;;  %v1082_v34 = vmin.u32 %v449_v14, %v1797_v32  ;;  %vm786_vm13 = vcmp.lt.s32.totalorder %v785_v20, 2  ;;  %vm385_vm14 = vcmp.lt.s32.totalorder %v1620_v30, 0 }
 0x164   :  { %v853_v53 = vadd.s32 1, %v1801_v61  ;;  %v169_v43 = vadd.f32 %v1336_v51, %v1327_v42  ;;  %vm1823_vm15 = vcmp.le.f32.partialorder %v383_v50, 0.7853982  ;;  %v850_v49 = vmul.u32 %v1774_v25, %v834_v31 }
 0x165   :  { %v451_v24 = vclz %v1082_v34  ;;  %vm852_vm0 = vc.u32 %v1807_v36, %v1800_v5  ;;  %v489_v52 = vand.u32 2139095040, %v1811_v16  ;;  %v469_v45 = vsub.s32 4, %v445_v12 }
 0x166   :  { %v1172_v28 = vpop.eup %1171  ;;  %v854_v13 = vsel %vm852_vm0, %v853_v53, %v1801_v61  ;;  %v1003_v60 = vmul.f32 %v145_v1, %v145_v1  ;;  %v486_v51 = vand.u32 2147483647, %v1811_v16  ;;  %vm787_vm1 = vcmp.eq.s32.totalorder %v785_v20, 0 }
 0x167   :  { %v1174_v37 = vpop.eup %1173  ;;  %v791_v50 = vxor.u32 2147483648, %v1172_v28  ;;  %v1083_v63 = vadd.s32 4294967294, %v451_v24  ;;  %v855_v11 = vadd.s32 %v854_v13, %v850_v49  ;;  %v490_v9 = vshrl.u32 %v489_v52, 23 }
 0x168   :  { %v788_v44 = vxor.u32 2147483648, %v1174_v37  ;;  %vm790_vm2 = vcmp.eq.s32.totalorder %v785_v20, 2  ;;  %v439_v25 = vadd.s32 %v1743_v56, %v1760_v26  ;;  %v470_v3 = vsel %vm385_vm14, %v469_v45, %v445_v12 }
 0x169   :  { %v792_v33 = vsel %vm790_vm2, %v791_v50, %v1174_v37  ;;  %vm1084_vm3 = vcmp.lt.s32.totalorder %v1083_v63, 0  ;;  %v856_v62 = vadd.s32 536870912, %v855_v11  ;;  %v1085_v17 = vadd.s32 4294967169, %v490_v9 }
 0x16a   :  { %v789_v23 = vsel %vm787_vm1, %v1172_v28, %v788_v44  ;;  %v454_v21 = vsel %vm1084_vm3, 0, %v1083_v63  ;;  %v1011_v39 = vsub.f32 0.0, %v1003_v60  ;;  %v493_v38 = vand.u32 8388607, %v486_v51 }
 0x16b   :  { %v793_v46 = vsel %vm786_vm13, %v789_v23, %v792_v33  ;;  %v455_v47 = vsub.s32 32, %v454_v21  ;;  %v459_v55 = vsub.s32 4294967266, %v454_v21  ;;  %v1176_v40 = vpop.eup %1175  ;;  %v1842_v26 = vshrl.u32 %v856_v62, 30 }
 0x16c   :  { %v794_v56 = vsel %vm784_vm12, nan, %v793_v46  ;;  %v496_v27 = vadd.s32 1, %v1085_v17  ;;  %v1846_v57 = vadd.f32 %v1363_v15, %v1302_v19  ;;  %v456_v41 = vshll.u32 %v1797_v32, %v454_v21 }
 0x16d   :  { %v1038_v12 = vmul.f32 %v1176_v40, %v794_v56  ;;  %v457_v48 = vshrl.u32 %v439_v25, %v455_v47  ;;  %v460_v20 = vadd.s32 127, %v459_v55  ;;  %v472_v35 = vsel %vm1823_vm15, 0, %v470_v3 }
 0x16e   :  { %v858_v61 = vshll.u32 %v1842_v26, 30  ;;  %v1021_v14 = vmul.f32 1.442695, %v1011_v39  ;;  %vm497_vm4 = vcmp.gt.s32.totalorder %v496_v27, 0  ;;  %v494_v31 = vor.u32 8388608, %v493_v38 }
 0x16f   :  { %1046 = vst [vmem:[#allocation2 + $0x28] sm:$0xff] %v1038_v12  ;;  %v458_v29 = vor.u32 %v457_v48, %v456_v41  ;;  %v461_v59 = vshll.u32 %v460_v20, 23  ;;  %v498_v1 = vsel %vm497_vm4, %v496_v27, 0  ;;  %v901_v15 = vand.u32 2139095040, %v1846_v57 }
 0x170   :  { %v1852_v34 = vsub.s32 %v855_v11, %v858_v61  ;;  %v500_v19 = vand.u32 31, %v498_v1  ;;  %v1855_v53 = vand.u32 3, %v472_v35  ;;  %v1857_v24 = vmul.f32 %v169_v43, %v169_v43 }
 0x171   :  { %v462_v32 = vor.u32 4788187, %v461_v59  ;;  %v851_v49 = vadd.s32 %v1800_v5, %v1807_v36  ;;  %1177 = vpow2.f32 %v1021_v14  ;;  %v465_v13 = vcvt.s32.f32 %v458_v29 }
 0x172   :  { %v861_v52 = vsub.s32 0, %v1852_v34  ;;  %v501_v28 = vsub.s32 32, %v500_v19  ;;  %v881_v60 = vsub.s32 4, %v1842_v26  ;;  %v1863_v37 = vshll.u32 %v494_v31, 8 }
 0x173   :  { %v463_v45 = vand.u32 2147483647, %v462_v32  ;;  %v1866_v63 = vshrl.u32 %v498_v1, 5  ;;  %v503_v43 = vshll.u32 %v1226_v0, %v500_v19  ;;  %v902_v11 = vshrl.u32 %v901_v15, 23 }
 0x174   :  { %v1098_v50 = vmin.u32 %v861_v52, %v1852_v34  ;;  %v504_v5 = vshrl.u32 %v1227_v4, %v501_v28  ;;  %v506_v36 = vshll.u32 %v1227_v4, %v500_v19  ;;  %v507_v44 = vshrl.u32 %v1228_v6, %v501_v28 }
 0x175   :  { %v466_v9 = vmul.f32 %v465_v13, %v463_v45  ;;  %v509_v33 = vshll.u32 %v1228_v6, %v500_v19  ;;  %v510_v62 = vshrl.u32 %v1229_v8, %v501_v28  ;;  %v513_v17 = vshrl.u32 %v1230_v10, %v501_v28 }
 0x176   :  { %v863_v25 = vclz %v1098_v50  ;;  %v512_v21 = vshll.u32 %v1229_v8, %v500_v19  ;;  %v515_v3 = vshll.u32 %v1230_v10, %v500_v19  ;;  %v516_v39 = vshrl.u32 %v1231_v18, %v501_v28 }
 0x177   :  { %v467_v23 = vxor.u32 2147483648, %v466_v9  ;;  %v502_v47 = vshrl.u32 %v1226_v0, %v501_v28  ;;  %v505_v55 = vor.u32 %v504_v5, %v503_v43  ;;  %v508_v38 = vor.u32 %v507_v44, %v506_v36 }
 0x178   :  { %v1099_v46 = vadd.s32 4294967294, %v863_v25  ;;  %vm797_vm5 = vcmp.lt.s32.totalorder %v1634_v2, 0  ;;  %v511_v56 = vor.u32 %v510_v62, %v509_v33  ;;  %v514_v27 = vor.u32 %v513_v17, %v512_v21 }
 0x179   :  { %v468_v40 = vsel %vm385_vm14, %v467_v23, %v466_v9  ;;  %v517_v12 = vor.u32 %v516_v39, %v515_v3  ;;  %vm518_vm7 = vcmp.lt.s32.totalorder %v1866_v63, 1  ;;  %vm519_vm8 = vcmp.lt.s32.totalorder %v1866_v63, 2 }
 0x17a   :  { %v471_v41 = vsel %vm1823_vm15, %v1620_v30, %v468_v40  ;;  %vm1100_vm6 = vcmp.lt.s32.totalorder %v1099_v46, 0  ;;  %vm520_vm9 = vcmp.lt.s32.totalorder %v1866_v63, 3  ;;  %vm521_vm10 = vcmp.lt.s32.totalorder %v1866_v63, 4 }
 0x17b   :  { %1179 = vcosq.f32 %v471_v41  ;;  %v866_v48 = vsel %vm1100_vm6, 0, %v1099_v46  ;;  %v1889_v20 = vpop.eup %1177  ;;  %v526_v54 = vsel %vm518_vm7, %v505_v55, %v508_v38  ;;  %v523_v14 = vsel %vm521_vm10, %v511_v56, 2102212464 }
 0x17c   :  { %1181 = vsinq.f32 %v471_v41  ;;  %v867_v35 = vsub.s32 32, %v866_v48  ;;  %v871_v61 = vsub.s32 4294967266, %v866_v48  ;;  %v527_v29 = vsel %vm521_vm10, %v514_v27, 920167782 }
 0x17d   :  { %v530_v59 = vsel %vm518_vm7, %v508_v38, %v511_v56  ;;  %v531_v31 = vsel %vm521_vm10, %v517_v12, 1326507024  ;;  %v868_v1 = vshll.u32 %v1852_v34, %v866_v48  ;;  %v528_v32 = vsel %vm520_vm9, %v511_v56, %v527_v29 }
 0x17e   :  { %v869_v19 = vshrl.u32 %v851_v49, %v867_v35  ;;  %v872_v15 = vadd.s32 127, %v871_v61  ;;  %v522_v52 = vsel %vm518_vm7, %v502_v47, %v505_v55  ;;  %v529_v28 = vsel %vm519_vm8, %v526_v54, %v528_v32 }
 0x17f   :  { %v532_v45 = vsel %vm520_vm9, %v514_v27, %v531_v31  ;;  %v1101_v13 = vadd.s32 4294967169, %v902_v11  ;;  %v524_v34 = vsel %vm520_vm9, %v508_v38, %v523_v14  ;;  %vm475_vm11 = vweird.f32 %v1620_v30 }
 0x180   :  { %v870_v50 = vor.u32 %v869_v19, %v868_v1  ;;  %v873_v43 = vshll.u32 %v872_v15, 23  ;;  %v533_v49 = vsel %vm519_vm8, %v530_v59, %v532_v45  ;;  %v882_v25 = vsel %vm797_vm5, %v881_v60, %v1842_v26 }
 0x181   :  { %v1909_v9 = vmul.u32.u64.low %v1863_v37, %v533_v49  ;;  %v1910_v5 = vmul.u32.u64.high %v1863_v37, %v533_v49, %v1909_v9  ;;  %v1913_v36 = vmul.u32.u64.low %v1863_v37, %v529_v28  ;;  %v1914_v44 = vmul.u32.u64.high %v1863_v37, %v529_v28, %v1913_v36 }
 0x182   :  { %v874_v11 = vor.u32 4788187, %v873_v43  ;;  %v908_v33 = vadd.s32 1, %v1101_v13  ;;  %vm477_vm12 = vcmp.lt.s32.totalorder %v1855_v53, 2  ;;  %vm1924_vm13 = vcmp.le.f32.partialorder %v795_v22, 0.7853982 }
 0x183   :  { %v1015_v17 = vsub.f32 0.0, %v1857_v24  ;;  %v525_v23 = vsel %vm519_vm8, %v522_v52, %v524_v34  ;;  %v877_v3 = vcvt.s32.f32 %v870_v50  ;;  %v898_v39 = vand.u32 2147483647, %v1846_v57 }
 0x184   :  { %v875_v21 = vand.u32 2147483647, %v874_v11  ;;  %vm909_vm14 = vcmp.gt.s32.totalorder %v908_v33, 0  ;;  %v884_v60 = vsel %vm1924_vm13, 0, %v882_v25  ;;  %vm543_vm15 = vc.u32 %v1910_v5, %v1913_v36 }
 0x185   :  { %v1180_v26 = vpop.eup %1179  ;;  %v544_v22 = vadd.s32 1, %v1914_v44  ;;  %v910_v46 = vsel %vm909_vm14, %v908_v33, 0  ;;  %v541_v63 = vmul.u32 %v1863_v37, %v525_v23  ;;  %vm478_vm0 = vcmp.eq.s32.totalorder %v1855_v53, 0 }
 0x186   :  { %v1182_v47 = vpop.eup %1181  ;;  %v482_v24 = vxor.u32 2147483648, %v1180_v26  ;;  %v878_v55 = vmul.f32 %v877_v3, %v875_v21  ;;  %v912_v38 = vand.u32 31, %v910_v46  ;;  %vm481_vm1 = vcmp.eq.s32.totalorder %v1855_v53, 2 }
 0x187   :  { %v479_v40 = vxor.u32 2147483648, %v1182_v47  ;;  %v545_v56 = vsel %vm543_vm15, %v544_v22, %v1914_v44  ;;  %v1941_v61 = vand.u32 3, %v884_v60  ;;  %v1029_v54 = vmul.f32 1.442695, %v1015_v17 }
 0x188   :  { %v483_v27 = vsel %vm481_vm1, %v482_v24, %v1182_v47  ;;  %v879_v12 = vxor.u32 2147483648, %v878_v55  ;;  %v546_v41 = vadd.s32 %v545_v56, %v541_v63  ;;  %v913_v48 = vsub.s32 32, %v912_v38 }
 0x189   :  { %v480_v35 = vsel %vm478_vm0, %v1180_v26, %v479_v40  ;;  %v905_v14 = vand.u32 8388607, %v898_v39  ;;  %v915_v31 = vshll.u32 %v1226_v0, %v912_v38  ;;  %v911_v45 = vshrl.u32 %v910_v46, 5 }
 0x18a   :  { %v484_v37 = vsel %vm477_vm12, %v480_v35, %v483_v27  ;;  %v880_v29 = vsel %vm797_vm5, %v879_v12, %v878_v55  ;;  %v547_v59 = vadd.s32 536870912, %v546_v41  ;;  %v916_v15 = vshrl.u32 %v1227_v4, %v913_v48 }
 0x18b   :  { %v485_v1 = vsel %vm475_vm11, nan, %v484_v37  ;;  %v883_v19 = vsel %vm1924_vm13, %v1634_v2, %v880_v29  ;;  %v919_v32 = vshrl.u32 %v1228_v6, %v913_v48  ;;  %v922_v28 = vshrl.u32 %v1229_v8, %v913_v48 }
 0x18c   :  { %1183 = vcosq.f32 %v883_v19  ;;  %v1035_v53 = vmul.f32 %v1889_v20, %v485_v1  ;;  %v1958_v52 = vshrl.u32 %v547_v59, 30  ;;  %v918_v30 = vshll.u32 %v1227_v4, %v912_v38 }
 0x18d   :  { %1185 = vsinq.f32 %v883_v19  ;;  %v921_v13 = vshll.u32 %v1228_v6, %v912_v38  ;;  %v917_v43 = vor.u32 %v916_v15, %v915_v31  ;;  %v924_v34 = vshll.u32 %v1229_v8, %v912_v38 }
 0x18e   :  { %1043 = vst [vmem:[#allocation2 + $0x10] sm:$0xff] %v1035_v53  ;;  %v549_v50 = vshll.u32 %v1958_v52, 30  ;;  %v925_v49 = vshrl.u32 %v1230_v10, %v913_v48  ;;  %v920_v9 = vor.u32 %v919_v32, %v918_v30  ;;  %v927_v44 = vshll.u32 %v1230_v10, %v912_v38 }
 0x18f   :  { %v923_v20 = vor.u32 %v922_v28, %v921_v13  ;;  %v928_v11 = vshrl.u32 %v1231_v18, %v913_v48  ;;  %1187 = vpow2.f32 %v1029_v54  ;;  %v906_v4 = vor.u32 8388608, %v905_v14 }
 0x190   :  { %v550_v25 = vsub.s32 %v546_v41, %v549_v50  ;;  %v926_v33 = vor.u32 %v925_v49, %v924_v34  ;;  %vm893_vm2 = vcmp.eq.s32.totalorder %v1941_v61, 2  ;;  %vm930_vm3 = vcmp.lt.s32.totalorder %v911_v45, 1 }
 0x191   :  { %v929_v62 = vor.u32 %v928_v11, %v927_v44  ;;  %vm933_vm4 = vcmp.lt.s32.totalorder %v911_v45, 4  ;;  %v938_v8 = vsel %vm930_vm3, %v917_v43, %v920_v9  ;;  %v942_v23 = vsel %vm930_vm3, %v920_v9, %v923_v20 }
 0x192   :  { %v552_v6 = vsub.s32 0, %v550_v25  ;;  %v939_v17 = vsel %vm933_vm4, %v926_v33, 920167782  ;;  %v914_v10 = vshrl.u32 %v1226_v0, %v913_v48  ;;  %vm932_vm5 = vcmp.lt.s32.totalorder %v911_v45, 3 }
 0x193   :  { %v943_v21 = vsel %vm933_vm4, %v929_v62, 1326507024  ;;  %v935_v18 = vsel %vm933_vm4, %v923_v20, 2102212464  ;;  %vm931_vm6 = vcmp.lt.s32.totalorder %v911_v45, 2  ;;  %v940_v26 = vsel %vm932_vm5, %v923_v20, %v939_v17 }
 0x194   :  { %v1086_v3 = vmin.u32 %v552_v6, %v550_v25  ;;  %v944_v60 = vsel %vm932_vm5, %v926_v33, %v943_v21  ;;  %v946_v22 = vshll.u32 %v906_v4, 8  ;;  %v934_v24 = vsel %vm930_vm3, %v914_v10, %v917_v43 }
 0x195   :  { %v941_v55 = vsel %vm931_vm6, %v938_v8, %v940_v26  ;;  %v945_v63 = vsel %vm931_vm6, %v942_v23, %v944_v60  ;;  %v936_v56 = vsel %vm932_vm5, %v920_v9, %v935_v18  ;;  %vm890_vm7 = vcmp.eq.s32.totalorder %v1941_v61, 0 }
 0x196   :  { %v1184_v46 = vpop.eup %1183  ;;  %v554_v47 = vclz %v1086_v3  ;;  %v1975_v27 = vmul.u32.u64.low %v946_v22, %v945_v63  ;;  %v1976_v12 = vmul.u32.u64.high %v946_v22, %v945_v63, %v1975_v27  ;;  %vm887_vm8 = vweird.f32 %v1634_v2 }
 0x197   :  { %v1186_v38 = vpop.eup %1185  ;;  %v894_v40 = vxor.u32 2147483648, %v1184_v46  ;;  %v1978_v48 = vmul.u32.u64.low %v946_v22, %v941_v55  ;;  %v1979_v35 = vmul.u32.u64.high %v946_v22, %v941_v55, %v1978_v48  ;;  %vm889_vm9 = vcmp.lt.s32.totalorder %v1941_v61, 2 }
 0x198   :  { %v891_v0 = vxor.u32 2147483648, %v1186_v38  ;;  %v1087_v41 = vadd.s32 4294967294, %v554_v47  ;;  %v542_v59 = vadd.s32 %v1913_v36, %v1910_v5  ;;  %v937_v1 = vsel %vm931_vm6, %v934_v24, %v936_v56 }
 0x199   :  { %v895_v54 = vsel %vm893_vm2, %v894_v40, %v1186_v38  ;;  %v1188_v37 = vpop.eup %1187  ;;  %vm955_vm11 = vc.u32 %v1976_v12, %v1978_v48  ;;  %v956_v2 = vadd.s32 1, %v1979_v35  ;;  %v953_v13 = vmul.u32 %v946_v22, %v937_v1 }
 0x19a   :  { %v892_v14 = vsel %vm890_vm7, %v1184_v46, %v891_v0  ;;  %vm1088_vm10 = vcmp.lt.s32.totalorder %v1087_v41, 0  ;;  %v151_v49 = vadd.f32 %v1439_v58, %v1327_v42  ;;  %vm1999_vm12 = vcmp.le.f32.partialorder %v486_v51, 0.7853982 }
 0x19b   :  { %v896_v29 = vsel %vm889_vm9, %v892_v14, %v895_v54  ;;  %v557_v31 = vsel %vm1088_vm10, 0, %v1087_v41  ;;  %v957_v50 = vsel %vm955_vm11, %v956_v2, %v1979_v35  ;;  %vm488_vm13 = vcmp.lt.s32.totalorder %v1811_v16, 0 }
 0x19c   :  { %v897_v19 = vsel %vm887_vm8, nan, %v896_v29  ;;  %v558_v15 = vsub.s32 32, %v557_v31  ;;  %v562_v32 = vsub.s32 4294967266, %v557_v31  ;;  %v559_v28 = vshll.u32 %v550_v25, %v557_v31 }
 0x19d   :  { %v1039_v53 = vmul.f32 %v1188_v37, %v897_v19  ;;  %v958_v36 = vadd.s32 %v957_v50, %v953_v13  ;;  %v1004_v33 = vmul.f32 %v151_v49, %v151_v49  ;;  %v572_v58 = vsub.s32 4, %v1958_v52 }
 0x19e   :  { %v560_v61 = vshrl.u32 %v542_v59, %v558_v15  ;;  %v563_v30 = vadd.s32 127, %v562_v32  ;;  %v954_v47 = vadd.s32 %v1978_v48, %v1976_v12  ;;  %v175_v12 = vadd.f32 %v1477_v7, %v1327_v42 }
 0x19f   :  { %1047 = vst [vmem:[#allocation2 + $0x30] sm:$0xff] %v1039_v53  ;;  %v959_v34 = vadd.s32 536870912, %v958_v36  ;;  %v1012_v23 = vsub.f32 0.0, %v1004_v33  ;;  %v573_v10 = vsel %vm488_vm13, %v572_v58, %v1958_v52  ;;  %vm578_vm2 = vweird.f32 %v1811_v16 }
 0x1a0   :  { %v561_v43 = vor.u32 %v560_v61, %v559_v28  ;;  %v564_v5 = vshll.u32 %v563_v30, 23  ;;  %v575_v60 = vsel %vm1999_vm12, 0, %v573_v10  ;;  %v1008_v32 = vmul.f32 %v175_v12, %v175_v12 }
 0x1a1   :  { %v1994_v44 = vshrl.u32 %v959_v34, 30  ;;  %v1023_v18 = vmul.f32 1.442695, %v1012_v23  ;;  %v579_v46 = vand.u32 3, %v575_v60  ;;  %vm900_vm3 = vcmp.lt.s32.totalorder %v1846_v57, 0 }
 0x1a2   :  { %v565_v45 = vor.u32 4788187, %v564_v5  ;;  %v568_v20 = vcvt.s32.f32 %v561_v43  ;;  %vm899_vm4 = vcmp.le.f32.partialorder %v898_v39, 0.7853982  ;;  %v1016_v7 = vsub.f32 0.0, %v1008_v32 }
 0x1a3   :  { %v961_v25 = vshll.u32 %v1994_v44, 30  ;;  %vm584_vm15 = vcmp.eq.s32.totalorder %v579_v46, 2  ;;  %vm581_vm0 = vcmp.eq.s32.totalorder %v579_v46, 0  ;;  %vm580_vm1 = vcmp.lt.s32.totalorder %v579_v46, 2 }
 0x1a4   :  { %v566_v9 = vand.u32 2147483647, %v565_v45  ;;  %v984_v42 = vsub.s32 4, %v1994_v44  ;;  %v1031_v61 = vmul.f32 1.442695, %v1016_v7  ;;  %vm990_vm8 = vweird.f32 %v1846_v57 }
 0x1a5   :  { %v962_v62 = vsub.s32 %v958_v36, %v961_v25 }
 0x1a6   :  { %v569_v11 = vmul.f32 %v568_v20, %v566_v9  ;;  %v985_v28 = vsel %vm900_vm3, %v984_v42, %v1994_v44 }
 0x1a7   :  { %v964_v17 = vsub.s32 0, %v962_v62  ;;  %v987_v30 = vsel %vm899_vm4, 0, %v985_v28 }
 0x1a8   :  { %v570_v4 = vxor.u32 2147483648, %v569_v11  ;;  %v991_v13 = vand.u32 3, %v987_v30 }
 0x1a9   :  { %v1102_v3 = vmin.u32 %v964_v17, %v962_v62 }
 0x1aa   :  { %v571_v8 = vsel %vm488_vm13, %v570_v4, %v569_v11  ;;  %vm996_vm5 = vcmp.eq.s32.totalorder %v991_v13, 2  ;;  %vm993_vm6 = vcmp.eq.s32.totalorder %v991_v13, 0  ;;  %vm992_vm7 = vcmp.lt.s32.totalorder %v991_v13, 2 }
 0x1ab   :  { %v574_v21 = vsel %vm1999_vm12, %v1811_v16, %v571_v8  ;;  %v966_v51 = vclz %v1102_v3 }
 0x1ac   :  { %1189 = vcosq.f32 %v574_v21 }
 0x1ad   :  { %1191 = vsinq.f32 %v574_v21  ;;  %v1103_v26 = vadd.s32 4294967294, %v966_v51 }
 0x1ae   :  { %1193 = vpow2.f32 %v1023_v18 }
 0x1af   :  { %vm1104_vm14 = vcmp.lt.s32.totalorder %v1103_v26, 0 }
 0x1b0   :  { %v969_v22 = vsel %vm1104_vm14, 0, %v1103_v26 }
 0x1b1   :  { %v970_v24 = vsub.s32 32, %v969_v22  ;;  %v974_v55 = vsub.s32 4294967266, %v969_v22  ;;  %v971_v38 = vshll.u32 %v962_v62, %v969_v22 }
 0x1b3   :  { %v972_v40 = vshrl.u32 %v954_v47, %v970_v24  ;;  %v975_v56 = vadd.s32 127, %v974_v55 }
 0x1b5   :  { %v973_v41 = vor.u32 %v972_v40, %v971_v38  ;;  %v976_v35 = vshll.u32 %v975_v56, 23 }
 0x1b6   :  { %v1190_v63 = vpop.eup %1189 }
 0x1b7   :  { %v1192_v27 = vpop.eup %1191  ;;  %v585_v52 = vxor.u32 2147483648, %v1190_v63  ;;  %v977_v37 = vor.u32 4788187, %v976_v35  ;;  %v980_v1 = vcvt.s32.f32 %v973_v41 }
 0x1b8   :  { %v582_v0 = vxor.u32 2147483648, %v1192_v27  ;;  %v1194_v29 = vpop.eup %1193 }
 0x1b9   :  { %v586_v54 = vsel %vm584_vm15, %v585_v52, %v1192_v27  ;;  %v978_v31 = vand.u32 2147483647, %v977_v37 }
 0x1ba   :  { %v583_v14 = vsel %vm581_vm0, %v1190_v63, %v582_v0 }
 0x1bb   :  { %v587_v48 = vsel %vm580_vm1, %v583_v14, %v586_v54  ;;  %v981_v15 = vmul.f32 %v980_v1, %v978_v31 }
 0x1bc   :  { %v588_v59 = vsel %vm578_vm2, nan, %v587_v48 }
 0x1bd   :  { %v1036_v19 = vmul.f32 %v1194_v29, %v588_v59  ;;  %v982_v53 = vxor.u32 2147483648, %v981_v15 }
 0x1bf   :  { %1044 = vst [vmem:[#allocation2 + $0x18] sm:$0xff] %v1036_v19  ;;  %v983_v2 = vsel %vm900_vm3, %v982_v53, %v981_v15 }
 0x1c0   :  { %v986_v16 = vsel %vm899_vm4, %v1846_v57, %v983_v2 }
 0x1c1   :  { %1195 = vcosq.f32 %v986_v16 }
 0x1c2   :  { %1197 = vsinq.f32 %v986_v16 }
 0x1c3   :  { %1199 = vpow2.f32 %v1031_v61 }
 0x1cb   :  { %v1196_v50 = vpop.eup %1195 }
 0x1cc   :  { %v1198_v43 = vpop.eup %1197  ;;  %v997_v5 = vxor.u32 2147483648, %v1196_v50 }
 0x1cd   :  { %v994_v36 = vxor.u32 2147483648, %v1198_v43  ;;  %v1200_v49 = vpop.eup %1199 }
 0x1ce   :  { %v998_v39 = vsel %vm996_vm5, %v997_v5, %v1198_v43 }
 0x1cf   :  { %v995_v45 = vsel %vm993_vm6, %v1196_v50, %v994_v36 }
 0x1d0   :  { %v999_v34 = vsel %vm992_vm7, %v995_v45, %v998_v39 }
 0x1d1   :  { %v1000_v9 = vsel %vm990_vm8, nan, %v999_v34 }
 0x1d2   :  { %v1040_v20 = vmul.f32 %v1200_v49, %v1000_v9 }
 0x1d4   :  { %1048 = vst [vmem:[#allocation2 + $0x38] sm:$0xff] %v1040_v20 }
 0x1d5   :  { %1212 = shalt.err (!%p1209_p4)
}
 0x1d6   :  { %s1213_s13 = scalar_lea.hbm %s2037_s3, 1024 }
 0x1d7   :  { %p1214_p5 = scmp.ne.s32.totalorder %s2037_s3, %s1213_s13  ;;  %p1217_p6 = scmp.lt.u32.totalorder %s1213_s13, %s2037_s3 }
 0x1d9   :  { %p1219_p7 = pnand %p1217_p6, %p1214_p5 }
 0x1db   :  { %1222 = shalt.err (!%p1219_p7)
}
 0x1dc   :  { %s1233_s18 = smov 128   ;;  %s1234_s19 = smov 8  }
 0x1dd   :  { %1060 = dma.vmem_to_hbm [thread:$0]  %s1055_s2, 1024, %s2037_s3, [#allocation3], %s1233_s18, %s1233_s18, %s1234_s19  }
 0x1de   :  { %1223 = dma.done.wait [#allocation3], 1024  }
 0x1df   :  { %1224 = vsyncadd [#allocation3], 4294966272 }
 0x1e0   :  { %1064 = vsyncpa [#allocation3], 1 }

</bundles_post_ra>
